<compile_context>
chip_gen: v7x
topology: tpu7x:2x2x1
jax: 0.10.0
libtpu: 0.0.40
codegen_flags: <defaults>
</compile_context>

<pallas_src>
import functools

import jax
import jax.numpy as jnp
from jax.experimental import pallas as pl
from jax.experimental.pallas import tpu as pltpu

_BN_EPS = 1e-5                 # nn.BatchNorm2d default
_LANE = 128                    # pad channels to this for lane-dense MXU/DMA
_MAX_TILE_ROWS = 1024          # kernel-B M-tile bound (drop to 512 on v7x if VMEM-tight)
_VMEM_LIMIT = 64 * 1024 * 1024


def _round_up(x, m):
    return (x + m - 1) // m * m


def _cdiv(a, b):
    return -(-a // b)


# --------------------------------------------------------------------------
# Kernel A: implicit-GEMM 3x3 conv (+ fused 1x1 shortcut) + BN statistics.
#   grid = (N,): one batch sample per step; all weights VMEM-resident.
#   shortcut_mode: 0 = none, 1 = 1x1 conv shortcut, 2 = identity shortcut.
# --------------------------------------------------------------------------
def _conv_stats_kernel(xp_ref, w_ref, *rest, stride, ho, wo, shortcut_mode):
    if shortcut_mode == 1:
        ws_ref = rest[0]
        y_ref, res_ref, sum8_ref, ssq8_ref, rsum8_ref, rssq8_ref = rest[1:]
    elif shortcut_mode == 2:
        y_ref, res_ref, sum8_ref, ssq8_ref = rest
    else:
        y_ref, sum8_ref, ssq8_ref = rest

    first = pl.program_id(0) == 0
    m_rows = ho * wo
    c_pad = y_ref.shape[-1]

    acc = jnp.zeros((m_rows, c_pad), jnp.float32)
    racc = None
    for kh in range(3):
        for kw in range(3):
            p = (kh % stride) * stride + (kw % stride)     # phase index
            r0 = kh // stride                              # static row offset
            c0 = kw // stride                              # static col offset
            a = xp_ref[p, 0, r0:r0 + ho, c0:c0 + wo, :]    # (ho, wo, cin_p) bf16
            a = a.reshape(m_rows, a.shape[-1])
            acc += jnp.dot(a, w_ref[kh * 3 + kw],
                           preferred_element_type=jnp.float32)
            if kh == 1 and kw == 1:
                if shortcut_mode == 1:
                    # 1x1 shortcut: its LHS is exactly the center-tap slab.
                    racc = jnp.dot(a, ws_ref[...],
                                   preferred_element_type=jnp.float32)
                elif shortcut_mode == 2:
                    res_ref[...] = a.astype(res_ref.dtype)

    y_ref[...] = acc.astype(y_ref.dtype)

    # BN statistics: sublane-aligned partial sums into VMEM-resident outputs.
    @pl.when(first)
    def _():
        sum8_ref[...] = jnp.zeros_like(sum8_ref)
        ssq8_ref[...] = jnp.zeros_like(ssq8_ref)

    sum8_ref[...] += jnp.sum(acc.reshape(m_rows // 8, 8, c_pad), axis=0)
    ssq8_ref[...] += jnp.sum((acc * acc).reshape(m_rows // 8, 8, c_pad), axis=0)

    if shortcut_mode == 1:
        res_ref[...] = racc.astype(res_ref.dtype)

        @pl.when(first)
        def _():
            rsum8_ref[...] = jnp.zeros_like(rsum8_ref)
            rssq8_ref[...] = jnp.zeros_like(rssq8_ref)

        rsum8_ref[...] += jnp.sum(racc.reshape(m_rows // 8, 8, c_pad), axis=0)
        rssq8_ref[...] += jnp.sum((racc * racc).reshape(m_rows // 8, 8, c_pad),
                                  axis=0)


def _conv_bn_stats(phases, w_taps, *, stride, n, ho, wo,
                   shortcut_w=None, identity_res=False):
    """Implicit-GEMM conv + stats.  phases: (s*s, N, Hq, Wq, cin_p) bf16."""
    ss, _, hq, wq, cin_p = phases.shape
    c_pad = w_taps.shape[-1]
    m = n * ho * wo
    m_rows = ho * wo
    shortcut_mode = 1 if shortcut_w is not None else (2 if identity_res else 0)

    kernel = functools.partial(_conv_stats_kernel, stride=stride, ho=ho, wo=wo,
                               shortcut_mode=shortcut_mode)

    inputs = [phases, w_taps]
    in_specs = [
        pl.BlockSpec((ss, 1, hq, wq, cin_p), lambda i: (0, i, 0, 0, 0)),
        # Constant index_map -> weight stays VMEM-resident across the grid.
        # TODO(synk): pin to a single buffer (pl.Buffered(1)) once verified.
        pl.BlockSpec((9, cin_p, c_pad), lambda i: (0, 0, 0)),
    ]
    out_shapes = [jax.ShapeDtypeStruct((m, c_pad), jnp.bfloat16)]      # pre-BN y
    out_specs = [pl.BlockSpec((m_rows, c_pad), lambda i: (i, 0))]
    if shortcut_mode == 1:
        inputs.append(shortcut_w)
        in_specs.append(pl.BlockSpec((cin_p, c_pad), lambda i: (0, 0)))
    if shortcut_mode in (1, 2):
        out_shapes.append(jax.ShapeDtypeStruct((m, c_pad), jnp.bfloat16))  # res
        out_specs.append(pl.BlockSpec((m_rows, c_pad), lambda i: (i, 0)))
    n_stats = 4 if shortcut_mode == 1 else 2
    out_shapes += [jax.ShapeDtypeStruct((8, c_pad), jnp.float32)] * n_stats
    out_specs += [pl.BlockSpec((8, c_pad), lambda i: (0, 0))] * n_stats

    flops = 2 * m * (9 * cin_p) * c_pad
    bytes_accessed = (int(phases.size) * 2 + int(w_taps.size) * 2
                      + m * c_pad * 2 * (2 if shortcut_mode else 1))
    return pl.pallas_call(
        kernel,
        out_shape=tuple(out_shapes),
        grid=(n,),
        in_specs=in_specs,
        out_specs=tuple(out_specs),
        compiler_params=pltpu.CompilerParams(
            dimension_semantics=("arbitrary",),        # stats accumulate over N
            vmem_limit_bytes=_VMEM_LIMIT),
        cost_estimate=pl.CostEstimate(flops=flops, transcendentals=0,
                                      bytes_accessed=bytes_accessed),
    )(*inputs)


# --------------------------------------------------------------------------
# Kernel B: folded-BN apply (+ folded shortcut BN + residual) + ReLU, tiled.
# --------------------------------------------------------------------------
def _bn_apply_kernel(y_ref, scale_ref, shift_ref, *rest, has_res, apply_relu):
    if has_res:
        r_ref, rs_ref, rb_ref, o_ref = rest
    else:
        (o_ref,) = rest
    out = y_ref[...].astype(jnp.float32) * scale_ref[...] + shift_ref[...]
    if has_res:
        out = out + (r_ref[...].astype(jnp.float32) * rs_ref[...] + rb_ref[...])
    if apply_relu:
        out = jnp.maximum(out, 0.0)
    o_ref[...] = out.astype(o_ref.dtype)


def _bn_apply(y, scale, shift, residual=None, res_scale=None, res_shift=None,
              apply_relu=True, out_dtype=jnp.float32):
    m, c_pad = y.shape
    has_res = residual is not None
    # Balanced tiles (minimize dead-row padding), multiple of 16 for bf16 tiles.
    n_tiles = _cdiv(m, _MAX_TILE_ROWS)
    tile_rows = _round_up(_cdiv(m, n_tiles), 16)
    m_pad = n_tiles * tile_rows
    if m_pad != m:
        y = jnp.pad(y, ((0, m_pad - m), (0, 0)))
        if has_res:
            residual = jnp.pad(residual, ((0, m_pad - m), (0, 0)))

    inputs = [y, scale, shift]
    in_specs = [
        pl.BlockSpec((tile_rows, c_pad), lambda i: (i, 0)),
        pl.BlockSpec((1, c_pad), lambda i: (0, 0)),
        pl.BlockSpec((1, c_pad), lambda i: (0, 0)),
    ]
    if has_res:
        inputs += [residual, res_scale, res_shift]
        in_specs += [
            pl.BlockSpec((tile_rows, c_pad), lambda i: (i, 0)),
            pl.BlockSpec((1, c_pad), lambda i: (0, 0)),
            pl.BlockSpec((1, c_pad), lambda i: (0, 0)),
        ]

    kernel = functools.partial(_bn_apply_kernel, has_res=has_res,
                               apply_relu=apply_relu)
    bytes_accessed = (sum(int(a.size) * a.dtype.itemsize for a in inputs)
                      + m_pad * c_pad * jnp.dtype(out_dtype).itemsize)
    out = pl.pallas_call(
        kernel,
        out_shape=jax.ShapeDtypeStruct((m_pad, c_pad), out_dtype),
        grid=(m_pad // tile_rows,),
        in_specs=in_specs,
        out_specs=pl.BlockSpec((tile_rows, c_pad), lambda i: (i, 0)),
        compiler_params=pltpu.CompilerParams(
            dimension_semantics=("parallel",),
            vmem_limit_bytes=_VMEM_LIMIT),
        cost_estimate=pl.CostEstimate(flops=6 * m_pad * c_pad, transcendentals=0,
                                      bytes_accessed=bytes_accessed),
    )(*inputs)
    return out[:m] if m_pad != m else out


# --------------------------------------------------------------------------
# Host-side prep (pure re-layout, no 9x expansion): phases, weights, BN fold.
# --------------------------------------------------------------------------
def _build_phases(x_nhwc, stride, ho, wo, cin_p):
    """NHWC -> (s*s, N, Hq, Wq, cin_p) bf16; tap (kh,kw) of a 3x3/pad-1 conv
    reads phases[(kh%s)*s+(kw%s), n, kh//s:kh//s+Ho, kw//s:kw//s+Wo, :]."""
    n, h, w, c = x_nhwc.shape
    s = stride
    hq, wq = ho + 2 // s, wo + 2 // s
    xp = jnp.pad(x_nhwc, ((0, 0), (1, 1), (1, 1), (0, cin_p - c)))
    slabs = []
    for ph in range(s):
        for pw in range(s):
            sl = xp[:, ph::s, pw::s, :][:, :hq, :wq, :]
            dh, dw = hq - sl.shape[1], wq - sl.shape[2]
            if dh or dw:
                sl = jnp.pad(sl, ((0, 0), (0, dh), (0, dw), (0, 0)))
            slabs.append(sl)
    return jnp.stack(slabs, axis=0).astype(jnp.bfloat16)


def _w3x3_to_taps(w, cin_p, c_pad):
    """(Cout, Cin, 3, 3) -> (9, cin_p, c_pad) bf16, tap-major (kh*3+kw)."""
    cout, cin = w.shape[:2]
    wt = jnp.transpose(w, (2, 3, 1, 0)).reshape(9, cin, cout)
    wt = jnp.pad(wt, ((0, 0), (0, cin_p - cin), (0, c_pad - cout)))
    return wt.astype(jnp.bfloat16)


def _bn_scale_shift(sum8, ssq8, gamma, beta, m, c_pad):
    """Fold training-mode BN into per-channel (scale, shift), all f32."""
    col_sum = jnp.sum(sum8, axis=0, keepdims=True)
    col_ssq = jnp.sum(ssq8, axis=0, keepdims=True)
    mean = col_sum / m
    var = jnp.maximum(col_ssq / m - mean * mean, 0.0)
    g = jnp.pad(gamma.reshape(1, -1), ((0, 0), (0, c_pad - gamma.shape[0])))
    b = jnp.pad(beta.reshape(1, -1), ((0, 0), (0, c_pad - beta.shape[0])))
    scale = g * jax.lax.rsqrt(var + _BN_EPS)
    shift = b - mean * scale
    return scale, shift


# --------------------------------------------------------------------------
# ResBlk forward.
# --------------------------------------------------------------------------
def resblk_forward(x_nchw, params, stride):
    """ResBlk.forward. x_nchw: (N, Cin, H, W) -> (N, Cout, Ho, Wo)."""
    n, ch_in, h, w = x_nchw.shape
    ch_out = params["conv1_w"].shape[0]
    if ch_in == ch_out and stride != 1:
        raise ValueError("identity shortcut requires stride == 1")

    ho = (h + 2 - 3) // stride + 1
    wo = (w + 2 - 3) // stride + 1
    if wo % 8 != 0 or (ho * wo) % 16 != 0:
        raise ValueError("Wo must be a multiple of 8 (TPU sublane tiling)")
    m = n * ho * wo
    cin_p = _round_up(ch_in, _LANE)
    c_pad = _round_up(ch_out, _LANE)

    x = jnp.transpose(x_nchw, (0, 2, 3, 1)).astype(jnp.float32)      # NHWC

    # ---- conv1(3x3,stride) + shortcut (fused into the same kernel) -------
    # Conv biases are dropped: a bias added before training-mode BN cancels.
    phases1 = _build_phases(x, stride, ho, wo, cin_p)
    w1 = _w3x3_to_taps(params["conv1_w"], cin_p, c_pad)
    if ch_in != ch_out:
        ws = jnp.pad(params["convs_w"].reshape(ch_out, ch_in).T,
                     ((0, cin_p - ch_in), (0, c_pad - ch_out))).astype(jnp.bfloat16)
        y1, res, s1, q1, rs, rq = _conv_bn_stats(
            phases1, w1, stride=stride, n=n, ho=ho, wo=wo, shortcut_w=ws)
        res_scale, res_shift = _bn_scale_shift(rs, rq, params["bns_g"],
                                               params["bns_b"], m, c_pad)
    else:
        y1, res, s1, q1 = _conv_bn_stats(
            phases1, w1, stride=stride, n=n, ho=ho, wo=wo, identity_res=True)
        res_scale = jnp.ones((1, c_pad), jnp.float32)
        res_shift = jnp.zeros((1, c_pad), jnp.float32)

    sc1, sh1 = _bn_scale_shift(s1, q1, params["bn1_g"], params["bn1_b"], m, c_pad)
    out1 = _bn_apply(y1, sc1, sh1, apply_relu=True, out_dtype=jnp.bfloat16)

    # ---- conv2(3x3,1) + bn2 + (shortcut BN + residual) + relu ------------
    out1_nhwc = out1.reshape(n, ho, wo, c_pad)
    phases2 = _build_phases(out1_nhwc, 1, ho, wo, c_pad)
    w2 = _w3x3_to_taps(params["conv2_w"], c_pad, c_pad)
    y2, s2, q2 = _conv_bn_stats(phases2, w2, stride=1, n=n, ho=ho, wo=wo)
    sc2, sh2 = _bn_scale_shift(s2, q2, params["bn2_g"], params["bn2_b"], m, c_pad)
    out = _bn_apply(y2, sc2, sh2, residual=res, res_scale=res_scale,
                    res_shift=res_shift, apply_relu=True, out_dtype=jnp.float32)

    out = out[:, :ch_out].reshape(n, ho, wo, ch_out)
    return jnp.transpose(out, (0, 3, 1, 2))                          # NCHW


# --------------------------------------------------------------------------
# Pure-JAX f32 reference (includes conv biases; they cancel in training BN).
# --------------------------------------------------------------------------
def _im2col_3x3(x_nhwc, stride):
    n, h, w, c = x_nhwc.shape
    ho = (h + 2 - 3) // stride + 1
    wo = (w + 2 - 3) // stride + 1
    xp = jnp.pad(x_nhwc, ((0, 0), (1, 1), (1, 1), (0, 0)))
    cols = []
    for kh in range(3):
        for kw in range(3):
            cols.append(xp[:, kh:kh + (ho - 1) * stride + 1:stride,
                           kw:kw + (wo - 1) * stride + 1:stride, :])
    patches = jnp.stack(cols, axis=3)
    return patches.reshape(n * ho * wo, 9 * c), (n, ho, wo)


def _w3x3_to_mat(w):
    cout = w.shape[0]
    return jnp.transpose(w, (2, 3, 1, 0)).reshape(-1, cout)


def _resblk_reference(x_nchw, params, stride):
    x = jnp.transpose(x_nchw, (0, 2, 3, 1)).astype(jnp.float32)
    ch_in = x.shape[-1]
    ch_out = params["conv1_w"].shape[0]

    def conv_bn(p, wmat, bias, gamma, beta):
        y = p @ wmat + bias
        mean = jnp.mean(y, axis=0, keepdims=True)
        var = jnp.mean((y - mean) ** 2, axis=0, keepdims=True)
        return (y - mean) * jax.lax.rsqrt(var + _BN_EPS) * gamma + beta

    p1, (n, ho, wo) = _im2col_3x3(x, stride)
    o1 = jnp.maximum(conv_bn(p1, _w3x3_to_mat(params["conv1_w"]),
                             params["conv1_b"], params["bn1_g"],
                             params["bn1_b"]), 0.0)
    if ch_in != ch_out:
        xs = x[:, ::stride, ::stride, :].reshape(n * ho * wo, ch_in)
        res = conv_bn(xs, params["convs_w"].reshape(ch_out, ch_in).T,
                      params["convs_b"], params["bns_g"], params["bns_b"])
    else:
        res = x.reshape(n * ho * wo, ch_in)
    p2, _ = _im2col_3x3(o1.reshape(n, ho, wo, ch_out), 1)
    o2 = conv_bn(p2, _w3x3_to_mat(params["conv2_w"]),
                 params["conv2_b"], params["bn2_g"], params["bn2_b"])
    out = jnp.maximum(o2 + res, 0.0).reshape(n, ho, wo, ch_out)
    return jnp.transpose(out, (0, 3, 1, 2))


def init_params(key, ch_in, ch_out):
    ks = jax.random.split(key, 6)
    return {
        "conv1_w": 0.1 * jax.random.normal(ks[0], (ch_out, ch_in, 3, 3), jnp.float32),
        "conv1_b": 0.1 * jax.random.normal(ks[1], (ch_out,), jnp.float32),
        "bn1_g": jnp.ones((ch_out,), jnp.float32),
        "bn1_b": jnp.zeros((ch_out,), jnp.float32),
        "conv2_w": 0.1 * jax.random.normal(ks[2], (ch_out, ch_out, 3, 3), jnp.float32),
        "conv2_b": 0.1 * jax.random.normal(ks[3], (ch_out,), jnp.float32),
        "bn2_g": jnp.ones((ch_out,), jnp.float32),
        "bn2_b": jnp.zeros((ch_out,), jnp.float32),
        "convs_w": 0.1 * jax.random.normal(ks[4], (ch_out, ch_in, 1, 1), jnp.float32),
        "convs_b": 0.1 * jax.random.normal(ks[5], (ch_out,), jnp.float32),
        "bns_g": jnp.ones((ch_out,), jnp.float32),
        "bns_b": jnp.zeros((ch_out,), jnp.float32),
    }


def _check(out, ref, name):
    max_err = float(jnp.max(jnp.abs(out - ref)))
    tol = 0.05 * (1.0 + float(jnp.max(jnp.abs(ref))))    # bf16 intermediates
    assert max_err < tol, f"{name}: max_err={max_err} tol={tol}"


if __name__ == "__main__":
    key = jax.random.PRNGKey(0)
    k_x, k_p, k_x2, k_p2 = jax.random.split(key, 4)

    # Projection-shortcut block: ch_in != ch_out, stride 2.
    N, CH_IN, CH_OUT, H, W, STRIDE = 2, 4, 8, 16, 16, 2
    x = jax.random.normal(k_x, (N, CH_IN, H, W), jnp.float32)        # NCHW
    params = init_params(k_p, CH_IN, CH_OUT)
    out = resblk_forward(x, params, STRIDE)
    jax.block_until_ready(out)
    assert out.shape == (N, CH_OUT, H // STRIDE, W // STRIDE)
    _check(out, _resblk_reference(x, params, STRIDE), "projection")

    # Identity-shortcut block: ch_in == ch_out, stride 1.
    x2 = jax.random.normal(k_x2, (2, 8, 8, 8), jnp.float32)
    params2 = init_params(k_p2, 8, 8)
    out2 = resblk_forward(x2, params2, 1)
    jax.block_until_ready(out2)
    assert out2.shape == (2, 8, 8, 8)
    _check(out2, _resblk_reference(x2, params2, 1), "identity")

    print("KERNEL_OK")
</pallas_src>

<mosaic_0001>
module attributes {stable_mosaic.version = 11 : i64} {
  func.func @_conv_stats_kernel(%arg0: i32, %arg1: memref<4x1x9x9x128xbf16, #tpu.memory_space<vmem>>, %arg2: memref<9x128x128xbf16, #tpu.memory_space<vmem>>, %arg3: memref<128x128xbf16, #tpu.memory_space<vmem>>, %arg4: memref<64x128xbf16, #tpu.memory_space<vmem>>, %arg5: memref<64x128xbf16, #tpu.memory_space<vmem>>, %arg6: memref<8x128xf32, #tpu.memory_space<vmem>>, %arg7: memref<8x128xf32, #tpu.memory_space<vmem>>, %arg8: memref<8x128xf32, #tpu.memory_space<vmem>>, %arg9: memref<8x128xf32, #tpu.memory_space<vmem>>) attributes {dimension_semantics = [#tpu.dimension_semantics<arbitrary>], iteration_bounds = array<i64: 2>, scalar_prefetch = 0 : i64, scratch_operands = 0 : i64, tpu.core_type = #tpu.core_type<tc>, window_params = [{transform_indices = @transform_0, window_bounds = array<i64: 4, 1, 9, 9, 128>}, {pipeline_mode = #tpu.pipeline_mode<synchronous>, transform_indices = @transform_1, window_bounds = array<i64: 9, 128, 128>}, {pipeline_mode = #tpu.pipeline_mode<synchronous>, transform_indices = @transform_2, window_bounds = array<i64: 128, 128>}, {transform_indices = @transform_3, window_bounds = array<i64: 64, 128>}, {transform_indices = @transform_4, window_bounds = array<i64: 64, 128>}, {pipeline_mode = #tpu.pipeline_mode<synchronous>, transform_indices = @transform_5, window_bounds = array<i64: 8, 128>}, {pipeline_mode = #tpu.pipeline_mode<synchronous>, transform_indices = @transform_6, window_bounds = array<i64: 8, 128>}, {pipeline_mode = #tpu.pipeline_mode<synchronous>, transform_indices = @transform_7, window_bounds = array<i64: 8, 128>}, {pipeline_mode = #tpu.pipeline_mode<synchronous>, transform_indices = @transform_8, window_bounds = array<i64: 8, 128>}]} {
    %c0_i32 = arith.constant 0 : i32
    %0 = arith.cmpi eq, %arg0, %c0_i32 : i32
    %cst = arith.constant 0.000000e+00 : f32
    %1 = vector.broadcast %cst : f32 to vector<64x128xf32>
    %c0 = arith.constant 0 : index
    %c0_0 = arith.constant 0 : index
    %c0_1 = arith.constant 0 : index
    %c0_2 = arith.constant 0 : index
    %c0_3 = arith.constant 0 : index
    %2 = vector.load %arg1[%c0, %c0_0, %c0_1, %c0_2, %c0_3] : memref<4x1x9x9x128xbf16, #tpu.memory_space<vmem>>, vector<1x1x8x8x128xbf16>
    %3 = vector.shape_cast %2 : vector<1x1x8x8x128xbf16> to vector<8x8x128xbf16>
    %4 = vector.shape_cast %3 : vector<8x8x128xbf16> to vector<64x128xbf16>
    %c0_4 = arith.constant 0 : index
    %c0_5 = arith.constant 0 : index
    %c0_6 = arith.constant 0 : index
    %5 = vector.load %arg2[%c0_4, %c0_5, %c0_6] : memref<9x128x128xbf16, #tpu.memory_space<vmem>>, vector<1x128x128xbf16>
    %6 = vector.shape_cast %5 : vector<1x128x128xbf16> to vector<128x128xbf16>
    %cst_7 = arith.constant dense<0.000000e+00> : vector<64x128xf32>
    %7 = tpu.matmul %4, %6, %cst_7 {dimension_numbers = #tpu.dot_dimension_numbers<[1], [0], [0], [1], [0, 0, 1, 1], [], []>} : vector<64x128xbf16>, vector<128x128xbf16>, vector<64x128xf32> -> vector<64x128xf32>
    %8 = arith.addf %1, %7 : vector<64x128xf32>
    %c1 = arith.constant 1 : index
    %c0_8 = arith.constant 0 : index
    %c0_9 = arith.constant 0 : index
    %c0_10 = arith.constant 0 : index
    %c0_11 = arith.constant 0 : index
    %9 = vector.load %arg1[%c1, %c0_8, %c0_9, %c0_10, %c0_11] : memref<4x1x9x9x128xbf16, #tpu.memory_space<vmem>>, vector<1x1x8x8x128xbf16>
    %10 = vector.shape_cast %9 : vector<1x1x8x8x128xbf16> to vector<8x8x128xbf16>
    %11 = vector.shape_cast %10 : vector<8x8x128xbf16> to vector<64x128xbf16>
    %c1_12 = arith.constant 1 : index
    %c0_13 = arith.constant 0 : index
    %c0_14 = arith.constant 0 : index
    %12 = vector.load %arg2[%c1_12, %c0_13, %c0_14] : memref<9x128x128xbf16, #tpu.memory_space<vmem>>, vector<1x128x128xbf16>
    %13 = vector.shape_cast %12 : vector<1x128x128xbf16> to vector<128x128xbf16>
    %cst_15 = arith.constant dense<0.000000e+00> : vector<64x128xf32>
    %14 = tpu.matmul %11, %13, %cst_15 {dimension_numbers = #tpu.dot_dimension_numbers<[1], [0], [0], [1], [0, 0, 1, 1], [], []>} : vector<64x128xbf16>, vector<128x128xbf16>, vector<64x128xf32> -> vector<64x128xf32>
    %15 = arith.addf %8, %14 : vector<64x128xf32>
    %c0_16 = arith.constant 0 : index
    %c0_17 = arith.constant 0 : index
    %c0_18 = arith.constant 0 : index
    %c1_19 = arith.constant 1 : index
    %c0_20 = arith.constant 0 : index
    %16 = vector.load %arg1[%c0_16, %c0_17, %c0_18, %c1_19, %c0_20] : memref<4x1x9x9x128xbf16, #tpu.memory_space<vmem>>, vector<1x1x8x8x128xbf16>
    %17 = vector.shape_cast %16 : vector<1x1x8x8x128xbf16> to vector<8x8x128xbf16>
    %18 = vector.shape_cast %17 : vector<8x8x128xbf16> to vector<64x128xbf16>
    %c2 = arith.constant 2 : index
    %c0_21 = arith.constant 0 : index
    %c0_22 = arith.constant 0 : index
    %19 = vector.load %arg2[%c2, %c0_21, %c0_22] : memref<9x128x128xbf16, #tpu.memory_space<vmem>>, vector<1x128x128xbf16>
    %20 = vector.shape_cast %19 : vector<1x128x128xbf16> to vector<128x128xbf16>
    %cst_23 = arith.constant dense<0.000000e+00> : vector<64x128xf32>
    %21 = tpu.matmul %18, %20, %cst_23 {dimension_numbers = #tpu.dot_dimension_numbers<[1], [0], [0], [1], [0, 0, 1, 1], [], []>} : vector<64x128xbf16>, vector<128x128xbf16>, vector<64x128xf32> -> vector<64x128xf32>
    %22 = arith.addf %15, %21 : vector<64x128xf32>
    %c2_24 = arith.constant 2 : index
    %c0_25 = arith.constant 0 : index
    %c0_26 = arith.constant 0 : index
    %c0_27 = arith.constant 0 : index
    %c0_28 = arith.constant 0 : index
    %23 = vector.load %arg1[%c2_24, %c0_25, %c0_26, %c0_27, %c0_28] : memref<4x1x9x9x128xbf16, #tpu.memory_space<vmem>>, vector<1x1x8x8x128xbf16>
    %24 = vector.shape_cast %23 : vector<1x1x8x8x128xbf16> to vector<8x8x128xbf16>
    %25 = vector.shape_cast %24 : vector<8x8x128xbf16> to vector<64x128xbf16>
    %c3 = arith.constant 3 : index
    %c0_29 = arith.constant 0 : index
    %c0_30 = arith.constant 0 : index
    %26 = vector.load %arg2[%c3, %c0_29, %c0_30] : memref<9x128x128xbf16, #tpu.memory_space<vmem>>, vector<1x128x128xbf16>
    %27 = vector.shape_cast %26 : vector<1x128x128xbf16> to vector<128x128xbf16>
    %cst_31 = arith.constant dense<0.000000e+00> : vector<64x128xf32>
    %28 = tpu.matmul %25, %27, %cst_31 {dimension_numbers = #tpu.dot_dimension_numbers<[1], [0], [0], [1], [0, 0, 1, 1], [], []>} : vector<64x128xbf16>, vector<128x128xbf16>, vector<64x128xf32> -> vector<64x128xf32>
    %29 = arith.addf %22, %28 : vector<64x128xf32>
    %c3_32 = arith.constant 3 : index
    %c0_33 = arith.constant 0 : index
    %c0_34 = arith.constant 0 : index
    %c0_35 = arith.constant 0 : index
    %c0_36 = arith.constant 0 : index
    %30 = vector.load %arg1[%c3_32, %c0_33, %c0_34, %c0_35, %c0_36] : memref<4x1x9x9x128xbf16, #tpu.memory_space<vmem>>, vector<1x1x8x8x128xbf16>
    %31 = vector.shape_cast %30 : vector<1x1x8x8x128xbf16> to vector<8x8x128xbf16>
    %32 = vector.shape_cast %31 : vector<8x8x128xbf16> to vector<64x128xbf16>
    %c4 = arith.constant 4 : index
    %c0_37 = arith.constant 0 : index
    %c0_38 = arith.constant 0 : index
    %33 = vector.load %arg2[%c4, %c0_37, %c0_38] : memref<9x128x128xbf16, #tpu.memory_space<vmem>>, vector<1x128x128xbf16>
    %34 = vector.shape_cast %33 : vector<1x128x128xbf16> to vector<128x128xbf16>
    %cst_39 = arith.constant dense<0.000000e+00> : vector<64x128xf32>
    %35 = tpu.matmul %32, %34, %cst_39 {dimension_numbers = #tpu.dot_dimension_numbers<[1], [0], [0], [1], [0, 0, 1, 1], [], []>} : vector<64x128xbf16>, vector<128x128xbf16>, vector<64x128xf32> -> vector<64x128xf32>
    %36 = arith.addf %29, %35 : vector<64x128xf32>
    %c0_40 = arith.constant 0 : index
    %c0_41 = arith.constant 0 : index
    %37 = vector.load %arg3[%c0_40, %c0_41] : memref<128x128xbf16, #tpu.memory_space<vmem>>, vector<128x128xbf16>
    %cst_42 = arith.constant dense<0.000000e+00> : vector<64x128xf32>
    %38 = tpu.matmul %32, %37, %cst_42 {dimension_numbers = #tpu.dot_dimension_numbers<[1], [0], [0], [1], [0, 0, 1, 1], [], []>} : vector<64x128xbf16>, vector<128x128xbf16>, vector<64x128xf32> -> vector<64x128xf32>
    %c2_43 = arith.constant 2 : index
    %c0_44 = arith.constant 0 : index
    %c0_45 = arith.constant 0 : index
    %c1_46 = arith.constant 1 : index
    %c0_47 = arith.constant 0 : index
    %39 = vector.load %arg1[%c2_43, %c0_44, %c0_45, %c1_46, %c0_47] : memref<4x1x9x9x128xbf16, #tpu.memory_space<vmem>>, vector<1x1x8x8x128xbf16>
    %40 = vector.shape_cast %39 : vector<1x1x8x8x128xbf16> to vector<8x8x128xbf16>
    %41 = vector.shape_cast %40 : vector<8x8x128xbf16> to vector<64x128xbf16>
    %c5 = arith.constant 5 : index
    %c0_48 = arith.constant 0 : index
    %c0_49 = arith.constant 0 : index
    %42 = vector.load %arg2[%c5, %c0_48, %c0_49] : memref<9x128x128xbf16, #tpu.memory_space<vmem>>, vector<1x128x128xbf16>
    %43 = vector.shape_cast %42 : vector<1x128x128xbf16> to vector<128x128xbf16>
    %cst_50 = arith.constant dense<0.000000e+00> : vector<64x128xf32>
    %44 = tpu.matmul %41, %43, %cst_50 {dimension_numbers = #tpu.dot_dimension_numbers<[1], [0], [0], [1], [0, 0, 1, 1], [], []>} : vector<64x128xbf16>, vector<128x128xbf16>, vector<64x128xf32> -> vector<64x128xf32>
    %45 = arith.addf %36, %44 : vector<64x128xf32>
    %c0_51 = arith.constant 0 : index
    %c0_52 = arith.constant 0 : index
    %c1_53 = arith.constant 1 : index
    %c0_54 = arith.constant 0 : index
    %c0_55 = arith.constant 0 : index
    %46 = vector.load %arg1[%c0_51, %c0_52, %c1_53, %c0_54, %c0_55] : memref<4x1x9x9x128xbf16, #tpu.memory_space<vmem>>, vector<1x1x8x8x128xbf16>
    %47 = vector.shape_cast %46 : vector<1x1x8x8x128xbf16> to vector<8x8x128xbf16>
    %48 = vector.shape_cast %47 : vector<8x8x128xbf16> to vector<64x128xbf16>
    %c6 = arith.constant 6 : index
    %c0_56 = arith.constant 0 : index
    %c0_57 = arith.constant 0 : index
    %49 = vector.load %arg2[%c6, %c0_56, %c0_57] : memref<9x128x128xbf16, #tpu.memory_space<vmem>>, vector<1x128x128xbf16>
    %50 = vector.shape_cast %49 : vector<1x128x128xbf16> to vector<128x128xbf16>
    %cst_58 = arith.constant dense<0.000000e+00> : vector<64x128xf32>
    %51 = tpu.matmul %48, %50, %cst_58 {dimension_numbers = #tpu.dot_dimension_numbers<[1], [0], [0], [1], [0, 0, 1, 1], [], []>} : vector<64x128xbf16>, vector<128x128xbf16>, vector<64x128xf32> -> vector<64x128xf32>
    %52 = arith.addf %45, %51 : vector<64x128xf32>
    %c1_59 = arith.constant 1 : index
    %c0_60 = arith.constant 0 : index
    %c1_61 = arith.constant 1 : index
    %c0_62 = arith.constant 0 : index
    %c0_63 = arith.constant 0 : index
    %53 = vector.load %arg1[%c1_59, %c0_60, %c1_61, %c0_62, %c0_63] : memref<4x1x9x9x128xbf16, #tpu.memory_space<vmem>>, vector<1x1x8x8x128xbf16>
    %54 = vector.shape_cast %53 : vector<1x1x8x8x128xbf16> to vector<8x8x128xbf16>
    %55 = vector.shape_cast %54 : vector<8x8x128xbf16> to vector<64x128xbf16>
    %c7 = arith.constant 7 : index
    %c0_64 = arith.constant 0 : index
    %c0_65 = arith.constant 0 : index
    %56 = vector.load %arg2[%c7, %c0_64, %c0_65] : memref<9x128x128xbf16, #tpu.memory_space<vmem>>, vector<1x128x128xbf16>
    %57 = vector.shape_cast %56 : vector<1x128x128xbf16> to vector<128x128xbf16>
    %cst_66 = arith.constant dense<0.000000e+00> : vector<64x128xf32>
    %58 = tpu.matmul %55, %57, %cst_66 {dimension_numbers = #tpu.dot_dimension_numbers<[1], [0], [0], [1], [0, 0, 1, 1], [], []>} : vector<64x128xbf16>, vector<128x128xbf16>, vector<64x128xf32> -> vector<64x128xf32>
    %59 = arith.addf %52, %58 : vector<64x128xf32>
    %c0_67 = arith.constant 0 : index
    %c0_68 = arith.constant 0 : index
    %c1_69 = arith.constant 1 : index
    %c1_70 = arith.constant 1 : index
    %c0_71 = arith.constant 0 : index
    %60 = vector.load %arg1[%c0_67, %c0_68, %c1_69, %c1_70, %c0_71] : memref<4x1x9x9x128xbf16, #tpu.memory_space<vmem>>, vector<1x1x8x8x128xbf16>
    %61 = vector.shape_cast %60 : vector<1x1x8x8x128xbf16> to vector<8x8x128xbf16>
    %62 = vector.shape_cast %61 : vector<8x8x128xbf16> to vector<64x128xbf16>
    %c8 = arith.constant 8 : index
    %c0_72 = arith.constant 0 : index
    %c0_73 = arith.constant 0 : index
    %63 = vector.load %arg2[%c8, %c0_72, %c0_73] : memref<9x128x128xbf16, #tpu.memory_space<vmem>>, vector<1x128x128xbf16>
    %64 = vector.shape_cast %63 : vector<1x128x128xbf16> to vector<128x128xbf16>
    %cst_74 = arith.constant dense<0.000000e+00> : vector<64x128xf32>
    %65 = tpu.matmul %62, %64, %cst_74 {dimension_numbers = #tpu.dot_dimension_numbers<[1], [0], [0], [1], [0, 0, 1, 1], [], []>} : vector<64x128xbf16>, vector<128x128xbf16>, vector<64x128xf32> -> vector<64x128xf32>
    %66 = arith.addf %59, %65 : vector<64x128xf32>
    %67 = arith.truncf %66 : vector<64x128xf32> to vector<64x128xbf16>
    %c0_75 = arith.constant 0 : index
    %c0_76 = arith.constant 0 : index
    %68 = vector.load %arg4[%c0_75, %c0_76] : memref<64x128xbf16, #tpu.memory_space<vmem>>, vector<64x128xbf16>
    tpu.vector_store %arg4[%c0_75, %c0_76], %67 {strides = array<i32>} : memref<64x128xbf16, #tpu.memory_space<vmem>>, vector<64x128xbf16>,
    %69 = arith.extui %0 : i1 to i32
    %c0_i32_77 = arith.constant 0 : i32
    %70 = arith.cmpi ne, %69, %c0_i32_77 : i32
    scf.if %70 {
      %cst_101 = arith.constant 0.000000e+00 : f32
      %97 = vector.broadcast %cst_101 : f32 to vector<8x128xf32>
      %c0_102 = arith.constant 0 : index
      %c0_103 = arith.constant 0 : index
      %98 = vector.load %arg6[%c0_102, %c0_103] : memref<8x128xf32, #tpu.memory_space<vmem>>, vector<8x128xf32>
      tpu.vector_store %arg6[%c0_102, %c0_103], %97 {strides = array<i32>} : memref<8x128xf32, #tpu.memory_space<vmem>>, vector<8x128xf32>,
      %cst_104 = arith.constant 0.000000e+00 : f32
      %99 = vector.broadcast %cst_104 : f32 to vector<8x128xf32>
      %c0_105 = arith.constant 0 : index
      %c0_106 = arith.constant 0 : index
      %100 = vector.load %arg7[%c0_105, %c0_106] : memref<8x128xf32, #tpu.memory_space<vmem>>, vector<8x128xf32>
      tpu.vector_store %arg7[%c0_105, %c0_106], %99 {strides = array<i32>} : memref<8x128xf32, #tpu.memory_space<vmem>>, vector<8x128xf32>,
    } else {
    }
    %c0_78 = arith.constant 0 : index
    %c0_79 = arith.constant 0 : index
    %71 = vector.load %arg6[%c0_78, %c0_79] : memref<8x128xf32, #tpu.memory_space<vmem>>, vector<8x128xf32>
    %72 = vector.shape_cast %66 : vector<64x128xf32> to vector<8x8x128xf32>
    %cst_80 = arith.constant dense<0.000000e+00> : vector<8x128xf32>
    %73 = vector.multi_reduction <add>, %72, %cst_80 [0] : vector<8x8x128xf32> to vector<8x128xf32>
    %74 = arith.addf %71, %73 : vector<8x128xf32>
    %c0_81 = arith.constant 0 : index
    %c0_82 = arith.constant 0 : index
    %75 = vector.load %arg6[%c0_81, %c0_82] : memref<8x128xf32, #tpu.memory_space<vmem>>, vector<8x128xf32>
    tpu.vector_store %arg6[%c0_81, %c0_82], %74 {strides = array<i32>} : memref<8x128xf32, #tpu.memory_space<vmem>>, vector<8x128xf32>,
    %c0_83 = arith.constant 0 : index
    %c0_84 = arith.constant 0 : index
    %76 = vector.load %arg7[%c0_83, %c0_84] : memref<8x128xf32, #tpu.memory_space<vmem>>, vector<8x128xf32>
    %77 = arith.mulf %66, %66 : vector<64x128xf32>
    %78 = vector.shape_cast %77 : vector<64x128xf32> to vector<8x8x128xf32>
    %cst_85 = arith.constant dense<0.000000e+00> : vector<8x128xf32>
    %79 = vector.multi_reduction <add>, %78, %cst_85 [0] : vector<8x8x128xf32> to vector<8x128xf32>
    %80 = arith.addf %76, %79 : vector<8x128xf32>
    %c0_86 = arith.constant 0 : index
    %c0_87 = arith.constant 0 : index
    %81 = vector.load %arg7[%c0_86, %c0_87] : memref<8x128xf32, #tpu.memory_space<vmem>>, vector<8x128xf32>
    tpu.vector_store %arg7[%c0_86, %c0_87], %80 {strides = array<i32>} : memref<8x128xf32, #tpu.memory_space<vmem>>, vector<8x128xf32>,
    %82 = arith.truncf %38 : vector<64x128xf32> to vector<64x128xbf16>
    %c0_88 = arith.constant 0 : index
    %c0_89 = arith.constant 0 : index
    %83 = vector.load %arg5[%c0_88, %c0_89] : memref<64x128xbf16, #tpu.memory_space<vmem>>, vector<64x128xbf16>
    tpu.vector_store %arg5[%c0_88, %c0_89], %82 {strides = array<i32>} : memref<64x128xbf16, #tpu.memory_space<vmem>>, vector<64x128xbf16>,
    %84 = arith.extui %0 : i1 to i32
    %c0_i32_90 = arith.constant 0 : i32
    %85 = arith.cmpi ne, %84, %c0_i32_90 : i32
    scf.if %85 {
      %cst_101 = arith.constant 0.000000e+00 : f32
      %97 = vector.broadcast %cst_101 : f32 to vector<8x128xf32>
      %c0_102 = arith.constant 0 : index
      %c0_103 = arith.constant 0 : index
      %98 = vector.load %arg8[%c0_102, %c0_103] : memref<8x128xf32, #tpu.memory_space<vmem>>, vector<8x128xf32>
      tpu.vector_store %arg8[%c0_102, %c0_103], %97 {strides = array<i32>} : memref<8x128xf32, #tpu.memory_space<vmem>>, vector<8x128xf32>,
      %cst_104 = arith.constant 0.000000e+00 : f32
      %99 = vector.broadcast %cst_104 : f32 to vector<8x128xf32>
      %c0_105 = arith.constant 0 : index
      %c0_106 = arith.constant 0 : index
      %100 = vector.load %arg9[%c0_105, %c0_106] : memref<8x128xf32, #tpu.memory_space<vmem>>, vector<8x128xf32>
      tpu.vector_store %arg9[%c0_105, %c0_106], %99 {strides = array<i32>} : memref<8x128xf32, #tpu.memory_space<vmem>>, vector<8x128xf32>,
    } else {
    }
    %c0_91 = arith.constant 0 : index
    %c0_92 = arith.constant 0 : index
    %86 = vector.load %arg8[%c0_91, %c0_92] : memref<8x128xf32, #tpu.memory_space<vmem>>, vector<8x128xf32>
    %87 = vector.shape_cast %38 : vector<64x128xf32> to vector<8x8x128xf32>
    %cst_93 = arith.constant dense<0.000000e+00> : vector<8x128xf32>
    %88 = vector.multi_reduction <add>, %87, %cst_93 [0] : vector<8x8x128xf32> to vector<8x128xf32>
    %89 = arith.addf %86, %88 : vector<8x128xf32>
    %c0_94 = arith.constant 0 : index
    %c0_95 = arith.constant 0 : index
    %90 = vector.load %arg8[%c0_94, %c0_95] : memref<8x128xf32, #tpu.memory_space<vmem>>, vector<8x128xf32>
    tpu.vector_store %arg8[%c0_94, %c0_95], %89 {strides = array<i32>} : memref<8x128xf32, #tpu.memory_space<vmem>>, vector<8x128xf32>,
    %c0_96 = arith.constant 0 : index
    %c0_97 = arith.constant 0 : index
    %91 = vector.load %arg9[%c0_96, %c0_97] : memref<8x128xf32, #tpu.memory_space<vmem>>, vector<8x128xf32>
    %92 = arith.mulf %38, %38 : vector<64x128xf32>
    %93 = vector.shape_cast %92 : vector<64x128xf32> to vector<8x8x128xf32>
    %cst_98 = arith.constant dense<0.000000e+00> : vector<8x128xf32>
    %94 = vector.multi_reduction <add>, %93, %cst_98 [0] : vector<8x8x128xf32> to vector<8x128xf32>
    %95 = arith.addf %91, %94 : vector<8x128xf32>
    %c0_99 = arith.constant 0 : index
    %c0_100 = arith.constant 0 : index
    %96 = vector.load %arg9[%c0_99, %c0_100] : memref<8x128xf32, #tpu.memory_space<vmem>>, vector<8x128xf32>
    tpu.vector_store %arg9[%c0_99, %c0_100], %95 {strides = array<i32>} : memref<8x128xf32, #tpu.memory_space<vmem>>, vector<8x128xf32>,
    return
  }
  func.func @transform_0(%arg0: i32) -> (i32, i32, i32, i32, i32) {
    %c0_i32 = arith.constant 0 : i32
    %c0_i32_0 = arith.constant 0 : i32
    %c0_i32_1 = arith.constant 0 : i32
    %c0_i32_2 = arith.constant 0 : i32
    %c0_i32_3 = arith.constant 0 : i32
    return %c0_i32, %arg0, %c0_i32_0, %c0_i32_1, %c0_i32_2 : i32, i32, i32, i32, i32
  }
  func.func @transform_1(%arg0: i32) -> (i32, i32, i32) {
    %c0_i32 = arith.constant 0 : i32
    %c0_i32_0 = arith.constant 0 : i32
    %c0_i32_1 = arith.constant 0 : i32
    %c0_i32_2 = arith.constant 0 : i32
    return %c0_i32, %c0_i32_0, %c0_i32_1 : i32, i32, i32
  }
  func.func @transform_2(%arg0: i32) -> (i32, i32) {
    %c0_i32 = arith.constant 0 : i32
    %c0_i32_0 = arith.constant 0 : i32
    %c0_i32_1 = arith.constant 0 : i32
    return %c0_i32, %c0_i32_0 : i32, i32
  }
  func.func @transform_3(%arg0: i32) -> (i32, i32) {
    %c0_i32 = arith.constant 0 : i32
    %c0_i32_0 = arith.constant 0 : i32
    return %arg0, %c0_i32 : i32, i32
  }
  func.func @transform_4(%arg0: i32) -> (i32, i32) {
    %c0_i32 = arith.constant 0 : i32
    %c0_i32_0 = arith.constant 0 : i32
    return %arg0, %c0_i32 : i32, i32
  }
  func.func @transform_5(%arg0: i32) -> (i32, i32) {
    %c0_i32 = arith.constant 0 : i32
    %c0_i32_0 = arith.constant 0 : i32
    %c0_i32_1 = arith.constant 0 : i32
    return %c0_i32, %c0_i32_0 : i32, i32
  }
  func.func @transform_6(%arg0: i32) -> (i32, i32) {
    %c0_i32 = arith.constant 0 : i32
    %c0_i32_0 = arith.constant 0 : i32
    %c0_i32_1 = arith.constant 0 : i32
    return %c0_i32, %c0_i32_0 : i32, i32
  }
  func.func @transform_7(%arg0: i32) -> (i32, i32) {
    %c0_i32 = arith.constant 0 : i32
    %c0_i32_0 = arith.constant 0 : i32
    %c0_i32_1 = arith.constant 0 : i32
    return %c0_i32, %c0_i32_0 : i32, i32
  }
  func.func @transform_8(%arg0: i32) -> (i32, i32) {
    %c0_i32 = arith.constant 0 : i32
    %c0_i32_0 = arith.constant 0 : i32
    %c0_i32_1 = arith.constant 0 : i32
    return %c0_i32, %c0_i32_0 : i32, i32
  }
}

</mosaic_0001>

<bundles_post_ra>
// kernel: tpu_custom_call.1
= control target key start
LH: loop header
LB: loop body
LE: loop exit
PB: predicated region body
PF: predicated region fallthrough
CT: control target
= control target key end

     0   :  { %14 = vsyncpa [#allocation3], 0  ;;  %s4604_s0 = inlined_call_operand.hbm [shape: bf16[4,2,9,9,128], index: 0, kind: input, shape index: {}]   ;;  %s4605_s1 = inlined_call_operand.hbm [shape: bf16[9,128,128], index: 1, kind: input, shape index: {}]   ;;  %s4606_s2 = inlined_call_operand.hbm [shape: bf16[128,128], index: 2, kind: input, shape index: {}]   ;;  %s4607_s3 = inlined_call_operand.hbm [shape: bf16[128,128], index: 3, kind: output, shape index: {0}]   ;;  %s4608_s4 = inlined_call_operand.hbm [shape: bf16[128,128], index: 4, kind: output, shape index: {1}]   ;;  %s4609_s5 = inlined_call_operand.hbm [shape: f32[8,128], index: 5, kind: output, shape index: {2}]   ;;  %s4610_s6 = inlined_call_operand.hbm [shape: f32[8,128], index: 6, kind: output, shape index: {3}]   ;;  %s4611_s7 = inlined_call_operand.hbm [shape: f32[8,128], index: 7, kind: output, shape index: {4}]   ;;  %s4612_s8 = inlined_call_operand.hbm [shape: f32[8,128], index: 8, kind: output, shape index: {5}]  }
   0x1   :  { %16 = vsyncpa [#allocation3 + $0x1], 0 }
   0x2   :  { %17 = vsyncpa [#allocation6], 0 }
   0x3   :  { %18 = vsyncpa [#allocation4], 0 }
   0x4   :  { %20 = vsyncpa [#allocation4 + $0x1], 0 }
   0x5   :  { %21 = vsyncpa [#allocation10], 0 }
   0x6   :  { %23 = vsyncpa [#allocation10 + $0x1], 0 }
   0x7   :  { %24 = vsyncpa [#allocation13], 0 }
   0x8   :  { %25 = vsyncpa [#allocation16], 0  ;;  %s4049_s27 = smov 0   ;;  %s4051_s28 = smov 0  }
   0x9   :  { %s4053_s29 = smov 0   ;;  %s4055_s30 = smov 0  }
   0xa LB: > { %4624 = sst [smem:[#allocation27_spill]] %s3970_s27  ;;  %s4070_s9 = sadd.s32 4294967295, %s3982_s30   ;;  %s3982_s30 = sphi %s4055_s30, %s4665_s30   ;;  %s3978_s29 = sphi %s4053_s29, %s4669_s29   ;;  %s3974_s28 = sphi %s4051_s28, %s4668_s28   ;;  %s3970_s27 = sphi %s4049_s27, %s4667_s27  }
   0xb   : > { %s4613_s10 = sadd.s32 4294967294, %s3982_s30   ;;  %s4074_s11 = sadd.s32 1, %s3982_s30  }
   0xc   : > { %4625 = sst [smem:[#allocation28_spill]] %s4074_s11  ;;  %s38_s12 = sadd.s32 1, %s3978_s29 }
   0xd   : > { %s35_s13 = ssub.s32 %s3982_s30, %s4074_s11  ;;  %p45_p0 = scmp.ne.s32.totalorder %s3978_s29, %s3974_s28 }
   0xe   : > { %p36_p1 = scmp.eq.s32.totalorder %s35_s13, 0  ;;  %p46_p2 = scmp.eq.s32.totalorder %s3982_s30, 0 }
   0xf   : > { %p51_p3 = scmp.ne.s32.totalorder %s3974_s28, %s3970_s27  ;;  %p4615_p4 = scmp.eq.s32.totalorder %s4070_s9, 0 }
  0x10   : > { %s4086_s14 = scalar_select %p36_p1, %s3978_s29, %s38_s12  }
  0x11   : > { %p4088_p5 = por %p46_p2, %p45_p0  ;;  %p4094_p6 = por %p4615_p4, %p51_p3 }
  0x12   : > { %4626 = sst [smem:[#allocation29_spill]] %s4086_s14  ;;  %p4614_p7 = scmp.eq.s32.totalorder %s4070_s9, 1 }
  0x13   : > { %s4627_s15 = scalar_select %p4088_p5, 1, 0 }
  0x14   : > { %s4628_s16 = scalar_select %p4094_p6, 1, 0 }
  0x15   : > { %p123_p8 = scmp.eq.s32.totalorder %s4613_s10, 1  ;;  %p2761_p9 = scmp.ge.s32.totalorder %s3982_s30, 1 }
  0x16   : > { %p240_p10 = scmp.lt.s32.totalorder %s3982_s30, 3  ;;  %p4105_p11 = por %p4614_p7, %p45_p0 }
  0x17   : > { %p4109_p12 = por %p123_p8, %p51_p3  ;;  %s3984_s20 = smov [#allocation5]  }
  0x18   : > { %s4629_s17 = scalar_select %p4105_p11, 1, 0 }
  0x19   : > { %s4630_s18 = scalar_select %p4109_p12, 1, 0 }
  0x1a   : > { %p4113_p13 = pnand %p2761_p9, %p240_p10  ;;  %s252_s21 = sshll.u32 %s3984_s20, 4  ;;  %s253_s21 = int_to_ptr.vmem [resolvable:$true] %s252_s21 }
  0x1b   : > { %4631 = sst [smem:[#allocation30_spill]] %s4630_s18  ;;  %s3985_s23 = smov [#allocation7]  }
  0x1c   : > { %s4632_s19 = scalar_select %p4113_p13, 1, 0 }
  0x1d   : > { %p3523_p2 = pneg %p4113_p13  ;;  %s265_s24 = sshll.u32 %s3985_s23, 4  ;;  %s4126_s24 = int_to_ptr.vmem [resolvable:$true] %s265_s24 }
  0x1e   : > { %s3708_s12 = scalar_lea.hbm %s4605_s1, 9216 }
  0x1f   : > { %p4122_p0 = pnand %p3523_p2, %p4615_p4  ;;  %p3709_p3 = scmp.ne.s32.totalorder %s4605_s1, %s3708_s12 }
  0x20   : > { %p3715_p2 = scmp.lt.u32.totalorder %s3708_s12, %s4605_s1 }
  0x21   : > { %p3710_p8 = pneg %p4122_p0 }
  0x23   : > { %p3711_p9 = pnand %p3710_p8, %p3709_p3 }
  0x25   : > { %p3712_p10 = pneg %p3711_p9 }
  0x27   : > { %p3717_p7 = pnand %p3715_p2, %p3712_p10 }
  0x29   : > { %3720 = shalt.err (!%p3717_p7)
}
  0x2a   : > { %s3721_s23 = scalar_lea.vmem %s253_s21, 9216  ;;  %p3729_p11 = scmp.lt.s32.totalorder %s253_s21, %s253_s21 }
  0x2b   : > { %p3722_p1 = scmp.ne.s32.totalorder %s253_s21, %s3721_s23  ;;  %p3730_p6 = scmp.lt.s32.totalorder %s3721_s23, %s3721_s23 }
  0x2d   : > { %p3724_p4 = pnand %p3722_p1, %p3710_p8  ;;  %p3731_p13 = por %p3730_p6, %p3729_p11 }
  0x2f   : > { %p3725_p12 = pneg %p3724_p4 }
  0x31   : > { %p3732_p5 = pnand %p3731_p13, %p3725_p12 }
  0x33   : > { %3735 = shalt.err (!%p3732_p5)
}
  0x34   : > { %s3986_s10 = smov 64   ;;  %s3987_s25 = smov 4  }
  0x35   : > { %3526 = dma.hbm_to_vmem [thread:$0]  (!%p4122_p0), %s4605_s1, 9216, %s253_s21, [#allocation6], %s3986_s10, %s3986_s10, %s3987_s25  }
  0x36   : > { %s3736_s20 = scalar_lea.hbm %s4606_s2, 1024 }
  0x37   : > { %p3737_p4 = scmp.ne.s32.totalorder %s4606_s2, %s3736_s20  ;;  %p3743_p7 = scmp.lt.u32.totalorder %s3736_s20, %s4606_s2 }
  0x39   : > { %p3739_p5 = pnand %p3737_p4, %p3710_p8 }
  0x3b   : > { %p3740_p6 = pneg %p3739_p5 }
  0x3d   : > { %p3745_p11 = pnand %p3743_p7, %p3740_p6 }
  0x3f   : > { %3748 = shalt.err (!%p3745_p11)
}
  0x40   : > { %s3749_s21 = scalar_lea.vmem %s4126_s24, 1024  ;;  %p3757_p3 = scmp.lt.s32.totalorder %s4126_s24, %s4126_s24 }
  0x41   : > { %p3750_p12 = scmp.ne.s32.totalorder %s4126_s24, %s3749_s21  ;;  %p3758_p9 = scmp.lt.s32.totalorder %s3749_s21, %s3749_s21 }
  0x43   : > { %p3752_p13 = pnand %p3750_p12, %p3710_p8  ;;  %p3759_p10 = por %p3758_p9, %p3757_p3 }
  0x45   : > { %p3753_p1 = pneg %p3752_p13 }
  0x47   : > { %p3760_p2 = pnand %p3759_p10, %p3753_p1 }
  0x49   : > { %3763 = shalt.err (!%p3760_p2)
}
  0x4a   : > { %3529 = dma.hbm_to_vmem [thread:$0]  (!%p4122_p0), %s4606_s2, 1024, %s4126_s24, [#allocation6], %s3986_s10, %s3986_s10, %s3987_s25  }
  0x4b   : > { %p2764_p4 = scmp.ge.s32.totalorder %s3982_s30, 2 }
  0x4d   : > { %275 = sbr.rel (%p2764_p4) target bundleno = 100 (0x64), region = 24 }
  0x54   : > { %s279_s18 = sand.u32 1, %s3978_s29   ;;  %s3484_s14 = smul.u32 1152, %s3982_s30 }
  0x55   : > { %s3483_s22 = smul.u32 288, %s279_s18  ;;  %s3988_s26 = smov 2304  }
  0x56   : > { %p4634_p8 = scmp.ne.s32.totalorder %s4627_s15, 0  ;;  %s289_s12 = scalar_lea.hbm %s4604_s0, %s3484_s14 }
  0x57   : > { %s283_s20 = scalar_lea.vmem [#allocation2], %s3483_s22  ;;  %s3989_s21 = smov 1152  }
  0x58   : > { %3491 = sst [smem:[#allocation18]] (%p4634_p8), %s3988_s26  ;;  %s302_s23 = sshll.u32 %s283_s20, 4  ;;  %s303_s23 = int_to_ptr.vmem [resolvable:$true] %s302_s23 }
  0x59   : > { %s3490_s24 = scalar_select %p4634_p8, [#allocation0], [#allocation19] }
  0x5a   : > { %3492 = sst [smem:[#allocation18 + $0x1]] (%p4634_p8), %s3989_s21  ;;  %s3990_s27 = smov 18  }
  0x5b   : > { %s294_s13 = sld [smem:[%s3490_s24]]   ;;  %s3991_s11 = smov 64  }
  0x5c   : > { %3493 = sst [smem:[#allocation18 + $0x2]] (%p4634_p8), %s3990_s27  ;;  %s3992_s26 = smov 4  }
  0x5d   : > { %3494 = sst [smem:[#allocation18 + $0x3]] (%p4634_p8), %s3991_s11  ;;  %s280_s22 = scalar_lea.sflag [#allocation3], %s279_s18 }
  0x5e   : > { %3495 = sst [smem:[#allocation18 + $0x4]] (%p4634_p8), %s3991_s11  ;;  %s3993_s10 = smov [#allocation17]  }
  0x5f   : > { %3496 = sst [smem:[#allocation18 + $0x5]] (%p4634_p8), %s3992_s26 }
  0x61   : > { %s2766_s14 = sshll.u32 %s294_s13, 26 }
  0x62   : > { %s2767_s24 = sadd.s32 134217728, %s2766_s14 }
  0x63   : > { %3497 = dma.general (%p4634_p8), %s289_s12, 4608, %s303_s23, %s280_s22, %s3993_s10, [#allocation18], %s2767_s24, 0  }
  0x64 PF: > { %p4635_p0 = scmp.ne.s32.totalorder %s4632_s19, 0 }
  0x65   : > { %s4202_s25 = sand.u32 (!%p4635_p0), 1, %s3974_s28   ;;  %p4636_p5 = scmp.ne.s32.totalorder (!%p4635_p0), %s4628_s16, 0 }
  0x66   : > { %327 = sbr.rel (%p4635_p0) target bundleno = 672 (0x2a0), region = 32  ;;  %s330_s21 = scalar_lea.sflag (!%p4635_p0), [#allocation3], %s4202_s25 }
  0x67   : > { %s3485_s20 = smul.u32 (!%p4635_p0), 288, %s4202_s25 }
  0x69   : > { %s4206_s27 = scalar_lea.vmem (!%p4635_p0), [#allocation2], %s3485_s20 }
  0x6d   : > { %3941 = dma.done.wait (%p4636_p5), %s330_s21, 4608  }
  0x6e   : > { %3943 = vsyncadd (%p4636_p5), %s330_s21, 4294962688  ;;  %p4637_p6 = scmp.eq.s32.totalorder %s4070_s9, 0 }
  0x70   : > { %3945 = dma.done.wait (%p4637_p6), [#allocation6], 10240   ;;  %p4638_p7 = pmov %p4637_p6 }
  0x71   : > { %v3600_v0 = vld [vmem:[#allocation5 + $0x40] sm:$0xff]   ;;  %v3602_v2 = vld [vmem:[#allocation5 + $0x48] sm:$0xff]   ;;  %v3604_v4 = vld [vmem:[#allocation5 + $0x50] sm:$0xff]   ;;  %vm723_vm0 = vsmask.f32 3328  ;;  %s2771_s15 = sshll.u32 %s4202_s25, 5 }
  0x72   : > { %3947 = vsyncadd (%p4638_p7), [#allocation6], 4294957056  ;;  %v3601_v1 = vld [vmem:[#allocation5 + $0x100] sm:$0xff]   ;;  %3179 = vmatprep.subr.bf16.mxu1 %v3600_v0  ;;  %v3603_v3 = vld [vmem:[#allocation5 + $0x108] sm:$0xff]   ;;  %vm724_vm1 = vsmask.f32 7440 }
  0x73   : > { %3275 = vmatprep.subr.bf16.mxu0 %v3601_v1  ;;  %3180 = vmatpush3.bf16.msra.mxu1 %v3600_v0  ;;  %v3605_v5 = vld [vmem:[#allocation5 + $0x110] sm:$0xff]   ;;  %v3606_v6 = vld [vmem:[#allocation5 + $0x58] sm:$0xff]   ;;  %v3608_v8 = vld [vmem:[#allocation5 + $0x60] sm:$0xff]   ;;  %s4356_s16 = scalar_lea.vmem [#allocation8], %s2771_s15  ;;  %s4372_s19 = scalar_lea.vmem [#allocation9], %s2771_s15 }
  0x74   : > { %3276 = vmatpush3.bf16.msra.mxu0 %v3601_v1  ;;  %3181 = vmatprep.subr.bf16.mxu1 %v3602_v2  ;;  %v3607_v7 = vld [vmem:[#allocation5 + $0x118] sm:$0xff]   ;;  %v3609_v9 = vld [vmem:[#allocation5 + $0x120] sm:$0xff]   ;;  %v3610_v10 = vld [vmem:[#allocation5 + $0x68] sm:$0xff]   ;;  %p4641_p11 = scmp.ne.s32.totalorder %s4070_s9, 0 }
  0x75   : > { %3277 = vmatprep.subr.bf16.mxu0 %v3603_v3  ;;  %v3616_v11 = vld [vmem:[%s4206_s27 + $0x48] ss:$8 sps:$4 sm:$0xff]   ;;  %v3618_v13 = vld [vmem:[%s4206_s27 + $0xd8] ss:$8 sps:$4 sm:$0xff]   ;;  %v2866_v35 = vld [vmem:[%s4206_s27 + $0x94] sm:$0x1] }
  0x76   : > { %v3611_v12 = vld [vmem:[#allocation5 + $0x128] sm:$0xff]   ;;  %3195 = vmatprep.mubr.bf16.mxu1 %v3616_v11  ;;  %v3612_v14 = vld [vmem:[#allocation5 + $0x70] sm:$0xff]   ;;  %3291 = vmatprep.mubr.bf16.mxu0 %v3618_v13  ;;  %v3614_v16 = vld [vmem:[#allocation5 + $0x78] sm:$0xff]   ;;  %v1489_v40 = vshll.u32 %v2866_v35, 16 }
  0x77   : > { %3182 = vmatpush3.bf16.msra.mxu1 %v3602_v2  ;;  %v3613_v15 = vld [vmem:[#allocation5 + $0x130] sm:$0xff]   ;;  %v3615_v17 = vld [vmem:[#allocation5 + $0x138] sm:$0xff]   ;;  %v3617_v18 = vld [vmem:[#allocation5] sm:$0xff]  }
  0x78   : > { %3278 = vmatpush3.bf16.msra.mxu0 %v3603_v3  ;;  %3183 = vmatprep.subr.bf16.mxu1 %v3604_v4  ;;  %v3619_v19 = vld [vmem:[#allocation5 + $0x140] sm:$0xff]   ;;  %v3621_v21 = vld [vmem:[%s4206_s27 + $0xe8] ss:$8 sps:$4 sm:$0xff]   ;;  %v3626_v28 = vld [vmem:[#allocation5 + $0x18] sm:$0xff]   ;;  %v1491_v51 = vrot.slane %v1489_v40, 5 }
  0x79   : > { %3279 = vmatprep.subr.bf16.mxu0 %v3605_v5  ;;  %v3620_v20 = vld [vmem:[%s4206_s27 + $0x58] ss:$8 sps:$4 sm:$0xff]   ;;  %v3622_v22 = vld [vmem:[#allocation5 + $0x8] sm:$0xff]   ;;  %v3624_v26 = vld [vmem:[#allocation5 + $0x10] sm:$0xff]  }
  0x7a   : > { %v3623_v23 = vld [vmem:[#allocation5 + $0x148] sm:$0xff]   ;;  %v3634_v25 = vld [vmem:[%s4206_s27 + $0xf8] ss:$8 sps:$4 sm:$0xff]   ;;  %v3625_v27 = vld [vmem:[#allocation5 + $0x150] sm:$0xff]  }
  0x7b   : > { %3184 = vmatpush3.bf16.msra.mxu1 %v3604_v4  ;;  %v3632_v24 = vld [vmem:[%s4206_s27 + $0x68] ss:$8 sps:$4 sm:$0xff]   ;;  %v3636_v29 = vld [vmem:[%s4206_s27 + $0x78] ss:$8 sps:$4 sm:$0xff]   ;;  %v2868_v37 = vld [vmem:[%s4206_s27 + $0x9c] sm:$0x1] }
  0x7c   : > { %3280 = vmatpush3.bf16.msra.mxu0 %v3605_v5  ;;  %3185 = vmatprep.subr.bf16.mxu1 %v3606_v6  ;;  %v3637_v30 = vld [vmem:[%s4206_s27 + $0x108] ss:$8 sps:$4 sm:$0xff]   ;;  %v3627_v31 = vld [vmem:[#allocation5 + $0x158] sm:$0xff]   ;;  %v3628_v33 = vld [vmem:[#allocation5 + $0x20] sm:$0xff]   ;;  %v1503_v43 = vshll.u32 %v2868_v37, 16 }
  0x7d   : > { %3281 = vmatprep.subr.bf16.mxu0 %v3607_v7  ;;  %v3640_v32 = vld [vmem:[%s4206_s27] ss:$8 sps:$4 sm:$0xff]   ;;  %v2865_v34 = vld [vmem:[%s4206_s27 + $0x90] sm:$0xf]  ;;  %v2867_v36 = vld [vmem:[%s4206_s27 + $0x98] sm:$0xf] }
  0x7e   : > { %v1480_v38 = vshrl.u32 %v2865_v34, 16  ;;  %v1483_v39 = vshll.u32 %v2865_v34, 16  ;;  %v1494_v41 = vshrl.u32 %v2867_v36, 16  ;;  %v1497_v42 = vshll.u32 %v2867_v36, 16  ;;  %v3629_v44 = vld [vmem:[#allocation5 + $0x160] sm:$0xff]   ;;  %v3630_v48 = vld [vmem:[#allocation5 + $0x28] sm:$0xff]   ;;  %vm4232_vm2 = vmor %vm723_vm0, %vm724_vm1 }
  0x7f   : > { %3186 = vmatpush3.bf16.msra.mxu1 %v3606_v6  ;;  %v1505_v52 = vrot.slane %v1503_v43, 5  ;;  %v2869_v53 = vld [vmem:[%s4206_s27 + $0xa0] sm:$0xf]  ;;  %v2870_v54 = vld [vmem:[%s4206_s27 + $0xa4] sm:$0x1]  ;;  %v3631_v61 = vld [vmem:[#allocation5 + $0x168] sm:$0xff]  }
  0x80   : > { %3282 = vmatpush3.bf16.msra.mxu0 %v3607_v7  ;;  %3187 = vmatprep.subr.bf16.mxu1 %v3608_v8  ;;  %v1482_v45 = vrot.slane %v1480_v38, 4  ;;  %v1485_v46 = vrot.slane %v1483_v39, 5  ;;  %v1496_v47 = vrot.slane %v1494_v41, 4  ;;  %v1499_v49 = vrot.slane %v1497_v42, 5  ;;  %v2871_v57 = vld [vmem:[%s4206_s27 + $0xa8] sm:$0xf] }
  0x81   : > { %3283 = vmatprep.subr.bf16.mxu0 %v3609_v9  ;;  %v2872_v58 = vld [vmem:[%s4206_s27 + $0xac] sm:$0x1]  ;;  %v1508_v59 = vshrl.u32 %v2869_v53, 16  ;;  %v1511_v60 = vshll.u32 %v2869_v53, 16  ;;  %v1522_v63 = vshrl.u32 %v2871_v57, 16  ;;  %v1525_v0 = vshll.u32 %v2871_v57, 16 }
  0x82   : > { %v1486_v50 = vor.u32 %v1485_v46, %v1482_v45  ;;  %v1500_v56 = vor.u32 %v1499_v49, %v1496_v47  ;;  %v1517_v4 = vshll.u32 %v2870_v54, 16  ;;  %v3633_v5 = vld [vmem:[#allocation5 + $0x30] sm:$0xff]   ;;  %v3654_v39 = vld [vmem:[%s4206_s27 + $0x20] ss:$8 sps:$4 sm:$0xff]   ;;  %v2880_v54 = vld [vmem:[%s4206_s27 + $0xcc] sm:$0x1] }
  0x83   : > { %3188 = vmatpush3.bf16.msra.mxu1 %v3608_v8  ;;  %v1510_v2 = vrot.slane %v1508_v59, 4  ;;  %v1513_v3 = vrot.slane %v1511_v60, 5  ;;  %v1524_v7 = vrot.slane %v1522_v63, 4  ;;  %v1527_v8 = vrot.slane %v1525_v0, 5  ;;  %v3646_v42 = vld [vmem:[#allocation5 + $0x90] sm:$0xff]   ;;  %v3648_v0 = vld [vmem:[#allocation5 + $0x98] sm:$0xff]  }
  0x84   : > { %3284 = vmatpush3.bf16.msra.mxu0 %v3609_v9  ;;  %3189 = vmatprep.subr.bf16.mxu1 %v3610_v10  ;;  %v1487_v62 = vrot.slane %v1486_v50, 4  ;;  %v1501_v1 = vrot.slane %v1500_v56, 4  ;;  %v1531_v9 = vshll.u32 %v2872_v58, 16  ;;  %v3647_v45 = vld [vmem:[#allocation5 + $0x190] sm:$0xff]   ;;  %v2877_v49 = vld [vmem:[%s4206_s27 + $0xc0] sm:$0xf] }
  0x85   : > { %3285 = vmatprep.subr.bf16.mxu0 %v3611_v12  ;;  %v2879_v53 = vld [vmem:[%s4206_s27 + $0xc8] sm:$0xf]  ;;  %v1564_v57 = vshrl.u32 %v2877_v49, 16  ;;  %v1567_v58 = vshll.u32 %v2877_v49, 16  ;;  %v1587_v63 = vshll.u32 %v2880_v54, 16  ;;  %v3655_v54 = vld [vmem:[#allocation5 + $0xb0] sm:$0xff]  }
  0x86   : > { %v1492_v6 = vsel %vm4232_vm2, %v1487_v62, %v1491_v51  ;;  %v1506_v11 = vsel %vm4232_vm2, %v1501_v1, %v1505_v52  ;;  %v3657_v51 = vld [vmem:[%s4206_s27 + $0x30] ss:$8 sps:$4 sm:$0xff]   ;;  %v2878_v52 = vld [vmem:[%s4206_s27 + $0xc4] sm:$0x1]  ;;  %v1581_v62 = vshll.u32 %v2879_v53, 16 }
  0x87   : > { %3190 = vmatpush3.bf16.msra.mxu1 %v3610_v10  ;;  %v3635_v10 = vld [vmem:[#allocation5 + $0x170] sm:$0xff]   ;;  %v2881_v13 = vcombine.low %v1492_v6, %v1506_v11  ;;  %v1573_v59 = vshll.u32 %v2878_v52, 16 }
  0x88   : > { %3286 = vmatpush3.bf16.msra.mxu0 %v3611_v12  ;;  %3191 = vmatprep.subr.bf16.mxu1 %v3612_v14  ;;  %v1514_v12 = vor.u32 %v1513_v3, %v1510_v2  ;;  %v1566_v2 = vrot.slane %v1564_v57, 4  ;;  %v1569_v3 = vrot.slane %v1567_v58, 5 }
  0x89   : > { %3287 = vmatprep.subr.bf16.mxu0 %v3613_v15 }
  0x8a   : > { %v1570_v11 = vor.u32 %v1569_v3, %v1566_v2 }
  0x8b   : > { %3192 = vmatpush3.bf16.msra.mxu1 %v3612_v14  ;;  %v1528_v14 = vor.u32 %v1527_v8, %v1524_v7  ;;  %v1583_v8 = vrot.slane %v1581_v62, 5 }
  0x8c   : > { %3288 = vmatpush3.bf16.msra.mxu0 %v3613_v15  ;;  %3193 = vmatprep.subr.bf16.mxu1 %v3614_v16  ;;  %v3638_v15 = vld [vmem:[#allocation5 + $0x38] sm:$0xff]  }
  0x8d   : > { %3289 = vmatprep.subr.bf16.mxu0 %v3615_v17 }
  0x8f   : > { %3194 = vmatpush3.bf16.msra.mxu1 %v3614_v16  ;;  %v1519_v16 = vrot.slane %v1517_v4, 5  ;;  %v1575_v4 = vrot.slane %v1573_v59, 5 }
  0x90   : > { %3290 = vmatpush3.bf16.msra.mxu0 %v3615_v17  ;;  %3203 = vmatprep.subr.bf16.mxu1 %v3617_v18  ;;  %v1533_v17 = vrot.slane %v1531_v9, 5  ;;  %v1589_v9 = vrot.slane %v1587_v63, 5 }
  0x91   : > { %3323 = vmatprep.subr.bf16.mxu0 %v3619_v19 }
  0x92   : > { %3196 = vmatmul.mubr.bf16.vlgmr.msra.gmra.mrb[0].mxu1 %v3620_v20  ;;  %v3639_v20 = vld [vmem:[#allocation5 + $0x178] sm:$0xff]  }
  0x93   : > { %3204 = vmatpush3.bf16.msra.mxu1 %v3617_v18  ;;  %3292 = vmatmul.mubr.bf16.vlgmr.msra.gmra.mrb[0].mxu0 %v3621_v21  ;;  %v1515_v18 = vrot.slane %v1514_v12, 4  ;;  %v3641_v21 = vld [vmem:[#allocation5 + $0x80] sm:$0xff]  }
  0x94   : > { %3324 = vmatpush3.bf16.msra.mxu0 %v3619_v19  ;;  %3205 = vmatprep.subr.bf16.mxu1 %v3622_v22  ;;  %v1529_v19 = vrot.slane %v1528_v14, 4  ;;  %v707_v12 = vld [vmem:[%s4206_s27] sm:$0xf]  ;;  %v709_v14 = vld [vmem:[%s4206_s27 + $0x8] sm:$0xf] }
  0x95   : > { %3325 = vmatprep.subr.bf16.mxu0 %v3623_v23  ;;  %3199 = vmatprep.mubr.bf16.mxu1 %v3632_v24  ;;  %v3642_v24 = vld [vmem:[#allocation5 + $0x180] sm:$0xff]  }
  0x96   : > { %3295 = vmatprep.mubr.bf16.mxu0 %v3634_v25  ;;  %v3643_v25 = vld [vmem:[%s4206_s27 + $0x10] ss:$8 sps:$4 sm:$0xff]  }
  0x97   : > { %3206 = vmatpush3.bf16.msra.mxu1 %v3622_v22  ;;  %v1520_v22 = vsel %vm4232_vm2, %v1515_v18, %v1519_v16  ;;  %v727_v18 = vshrl.u32 %v707_v12, 16 }
  0x98   : > { %3326 = vmatpush3.bf16.msra.mxu0 %v3623_v23  ;;  %3207 = vmatprep.subr.bf16.mxu1 %v3624_v26  ;;  %v1534_v23 = vsel %vm4232_vm2, %v1529_v19, %v1533_v17  ;;  %v710_v17 = vld [vmem:[%s4206_s27 + $0xc] sm:$0x1]  ;;  %v730_v19 = vshll.u32 %v707_v12, 16  ;;  %v715_v12 = vld [vmem:[%s4206_s27 + $0x20] sm:$0xf] }
  0x99   : > { %3327 = vmatprep.subr.bf16.mxu0 %v3625_v27 }
  0x9a   : > { %3200 = vmatmul.mubr.bf16.gmra.mrb[4].mxu1 %v3636_v29  ;;  %v2882_v29 = vcombine.low %v1520_v22, %v1534_v23  ;;  %v741_v22 = vshrl.u32 %v709_v14, 16  ;;  %v744_v23 = vshll.u32 %v709_v14, 16 }
  0x9b   : > { %3208 = vmatpush3.bf16.msra.mxu1 %v3624_v26  ;;  %3296 = vmatmul.mubr.bf16.gmra.mrb[4].mxu0 %v3637_v30  ;;  %v3644_v26 = vld [vmem:[#allocation5 + $0x88] sm:$0xff]  }
  0x9c   : > { %3328 = vmatpush3.bf16.msra.mxu0 %v3625_v27  ;;  %3209 = vmatprep.subr.bf16.mxu1 %v3626_v28  ;;  %v2873_v27 = vld [vmem:[%s4206_s27 + $0xb0] sm:$0xf]  ;;  %v3645_v30 = vld [vmem:[#allocation5 + $0x188] sm:$0xff]  }
  0x9d   : > { %3329 = vmatprep.subr.bf16.mxu0 %v3627_v31  ;;  %3219 = vmatprep.mubr.bf16.mxu1 %v3640_v32  ;;  %v2876_v32 = vld [vmem:[%s4206_s27 + $0xbc] sm:$0x1]  ;;  %v1539_v34 = vshll.u32 %v2873_v27, 16 }
  0x9e   : > { %3339 = vmatprep.mubr.bf16.mxu0 %v2881_v13  ;;  %v1559_v38 = vshll.u32 %v2876_v32, 16  ;;  %v708_v13 = vld [vmem:[%s4206_s27 + $0x4] sm:$0x1]  ;;  %v746_v32 = vrot.slane %v744_v23, 5 }
  0x9f   : > { %3210 = vmatpush3.bf16.msra.mxu1 %v3626_v28  ;;  %v2874_v28 = vld [vmem:[%s4206_s27 + $0xb4] sm:$0x1]  ;;  %v1541_v41 = vrot.slane %v1539_v34, 5  ;;  %v3652_v34 = vld [vmem:[#allocation5 + $0xa8] sm:$0xff]  }
  0xa0   : > { %3330 = vmatpush3.bf16.msra.mxu0 %v3627_v31  ;;  %3211 = vmatprep.subr.bf16.mxu1 %v3628_v33  ;;  %v2875_v31 = vld [vmem:[%s4206_s27 + $0xb8] sm:$0xf]  ;;  %v1545_v35 = vshll.u32 %v2874_v28, 16 }
  0xa1   : > { %3331 = vmatprep.subr.bf16.mxu0 %v3629_v44  ;;  %v1550_v36 = vshrl.u32 %v2875_v31, 16  ;;  %v1553_v37 = vshll.u32 %v2875_v31, 16  ;;  %v743_v31 = vrot.slane %v741_v22, 4 }
  0xa2   : > { %v1547_v47 = vrot.slane %v1545_v35, 5 }
  0xa3   : > { %3212 = vmatpush3.bf16.msra.mxu1 %v3628_v33  ;;  %v1536_v33 = vshrl.u32 %v2873_v27, 16  ;;  %v1552_v43 = vrot.slane %v1550_v36, 4  ;;  %v732_v27 = vrot.slane %v730_v19, 5  ;;  %v786_v19 = vshll.u32 %v715_v12, 16 }
  0xa4   : > { %3332 = vmatpush3.bf16.msra.mxu0 %v3629_v44  ;;  %3213 = vmatprep.subr.bf16.mxu1 %v3630_v48  ;;  %v1555_v44 = vrot.slane %v1553_v37, 5  ;;  %v3661_v37 = vld [vmem:[%s4206_s27 + $0x8] ss:$8 sps:$4 sm:$0xff]  }
  0xa5   : > { %3333 = vmatprep.subr.bf16.mxu0 %v3631_v61  ;;  %v1538_v40 = vrot.slane %v1536_v33, 4 }
  0xa6   : > { %v1556_v50 = vor.u32 %v1555_v44, %v1552_v43  ;;  %v713_v44 = vld [vmem:[%s4206_s27 + $0x18] sm:$0xf] }
  0xa7   : > { %3214 = vmatpush3.bf16.msra.mxu1 %v3630_v48  ;;  %v1542_v46 = vor.u32 %v1541_v41, %v1538_v40  ;;  %v1561_v48 = vrot.slane %v1559_v38, 5  ;;  %v3653_v38 = vld [vmem:[#allocation5 + $0x1a8] sm:$0xff]   ;;  %v747_v40 = vor.u32 %v746_v32, %v743_v31  ;;  %v711_v41 = vld [vmem:[%s4206_s27 + $0x10] sm:$0xf] }
  0xa8   : > { %3334 = vmatpush3.bf16.msra.mxu0 %v3631_v61  ;;  %3215 = vmatprep.subr.bf16.mxu1 %v3633_v5  ;;  %v1557_v60 = vrot.slane %v1556_v50, 4  ;;  %v1578_v61 = vshrl.u32 %v2879_v53, 16  ;;  %v769_v50 = vshrl.u32 %v713_v44, 16  ;;  %v772_v53 = vshll.u32 %v713_v44, 16 }
  0xa9   : > { %3335 = vmatprep.subr.bf16.mxu0 %v3635_v10  ;;  %v1543_v56 = vrot.slane %v1542_v46, 4  ;;  %v755_v46 = vshrl.u32 %v711_v41, 16 }
  0xaa   : > { %v1562_v6 = vsel %vm4232_vm2, %v1557_v60, %v1561_v48  ;;  %v1580_v7 = vrot.slane %v1578_v61, 4  ;;  %v758_v48 = vshll.u32 %v711_v41, 16  ;;  %v771_v59 = vrot.slane %v769_v50, 4 }
  0xab   : > { %3216 = vmatpush3.bf16.msra.mxu1 %v3633_v5  ;;  %v1548_v1 = vsel %vm4232_vm2, %v1543_v56, %v1547_v47  ;;  %v3649_v5 = vld [vmem:[#allocation5 + $0x198] sm:$0xff]   ;;  %v748_v47 = vrot.slane %v747_v40, 4  ;;  %v757_v52 = vrot.slane %v755_v46, 4  ;;  %v3656_v56 = vld [vmem:[#allocation5 + $0x1b0] sm:$0xff]   ;;  %v774_v63 = vrot.slane %v772_v53, 5 }
  0xac   : > { %3336 = vmatpush3.bf16.msra.mxu0 %v3635_v10  ;;  %3217 = vmatprep.subr.bf16.mxu1 %v3638_v15  ;;  %v2883_v10 = vcombine.low %v1548_v1, %v1562_v6  ;;  %v1584_v16 = vor.u32 %v1583_v8, %v1580_v7  ;;  %v760_v58 = vrot.slane %v758_v48, 5  ;;  %v3659_v6 = vld [vmem:[#allocation5 + $0x1b8] sm:$0xff]   ;;  %v3660_v7 = vld [vmem:[#allocation5 + $0xc0] sm:$0xff]   ;;  %v3667_v40 = vld [vmem:[#allocation5 + $0x1d0] sm:$0xff]  }
  0xad   : > { %3337 = vmatprep.subr.bf16.mxu0 %v3639_v20  ;;  %v775_v1 = vor.u32 %v774_v63, %v771_v59  ;;  %v3677_v59 = vld [vmem:[%s4206_s27 + $0x38] ss:$8 sps:$4 sm:$0xff]  }
  0xae   : > { %v3669_v63 = vld [vmem:[#allocation5 + $0x1d8] sm:$0xff]  }
  0xaf   : > { %3218 = vmatpush3.bf16.msra.mxu1 %v3638_v15  ;;  %v3650_v15 = vld [vmem:[#allocation5 + $0xa0] sm:$0xff]  }
  0xb0   : > { %3338 = vmatpush3.bf16.msra.mxu0 %v3639_v20  ;;  %3227 = vmatprep.subr.bf16.mxu1 %v3641_v21  ;;  %v736_v20 = vshll.u32 %v708_v13, 16  ;;  %v716_v13 = vld [vmem:[%s4206_s27 + $0x24] sm:$0x1] }
  0xb1   : > { %3347 = vmatprep.subr.bf16.mxu0 %v3642_v24 }
  0xb2   : > { %3220 = vmatmul.mubr.bf16.vlgmr.msra.gmra.mrb[0].mxu1 %v3643_v25  ;;  %v1585_v25 = vrot.slane %v1584_v16, 4  ;;  %v738_v28 = vrot.slane %v736_v20, 5  ;;  %v717_v16 = vld [vmem:[%s4206_s27 + $0x28] sm:$0xf] }
  0xb3   : > { %3228 = vmatpush3.bf16.msra.mxu1 %v3641_v21  ;;  %3340 = vmatmul.mubr.bf16.vlgmr.msra.gmra.mrb[0].mxu0 %v2882_v29  ;;  %v1571_v21 = vrot.slane %v1570_v11, 4  ;;  %v3651_v29 = vld [vmem:[#allocation5 + $0x1a0] sm:$0xff]   ;;  %v3665_v20 = vld [vmem:[#allocation5 + $0x1c8] sm:$0xff]   ;;  %v797_v22 = vshrl.u32 %v717_v16, 16  ;;  %v800_v23 = vshll.u32 %v717_v16, 16 }
  0xb4   : > { %3348 = vmatpush3.bf16.msra.mxu0 %v3642_v24  ;;  %3229 = vmatprep.subr.bf16.mxu1 %v3644_v26  ;;  %v750_v24 = vshll.u32 %v710_v17, 16  ;;  %v1590_v35 = vsel %vm4232_vm2, %v1585_v25, %v1589_v9  ;;  %v3663_v11 = vld [vmem:[%s4206_s27 + $0x18] ss:$8 sps:$4 sm:$0xff]   ;;  %v718_v17 = vld [vmem:[%s4206_s27 + $0x2c] sm:$0x1] }
  0xb5   : > { %3349 = vmatprep.subr.bf16.mxu0 %v3645_v30  ;;  %3223 = vmatprep.mubr.bf16.mxu1 %v3654_v39  ;;  %v719_v25 = vld [vmem:[%s4206_s27 + $0x30] sm:$0xf]  ;;  %v799_v31 = vrot.slane %v797_v22, 4  ;;  %v802_v32 = vrot.slane %v800_v23, 5  ;;  %v3683_v16 = vld [vmem:[#allocation5 + $0x200] sm:$0xff]  }
  0xb6   : > { %3343 = vmatprep.mubr.bf16.mxu0 %v2883_v10  ;;  %v752_v33 = vrot.slane %v750_v24, 5  ;;  %v3662_v10 = vld [vmem:[#allocation5 + $0x1c0] sm:$0xff]   ;;  %v806_v24 = vshll.u32 %v718_v17, 16  ;;  %v2933_v22 = vld [vmem:[%s4206_s27 + $0x8] sm:$0xf] }
  0xb7   : > { %3230 = vmatpush3.bf16.msra.mxu1 %v3644_v26  ;;  %v729_v26 = vrot.slane %v727_v18, 4  ;;  %v783_v18 = vshrl.u32 %v715_v12, 16  ;;  %v803_v41 = vor.u32 %v802_v32, %v799_v31  ;;  %v3678_v12 = vld [vmem:[#allocation5 + $0xf8] sm:$0xff]   ;;  %v3684_v17 = vld [vmem:[%s4206_s27 + $0x60] ss:$8 sps:$4 sm:$0xff]  }
  0xb8   : > { %3350 = vmatpush3.bf16.msra.mxu0 %v3645_v30  ;;  %3231 = vmatprep.subr.bf16.mxu1 %v3646_v42  ;;  %v1576_v30 = vsel %vm4232_vm2, %v1571_v21, %v1575_v4  ;;  %v753_v57 = vsel %vm4232_vm2, %v748_v47, %v752_v33  ;;  %v3658_v4 = vld [vmem:[#allocation5 + $0xb8] sm:$0xff]   ;;  %v792_v21 = vshll.u32 %v716_v13, 16  ;;  %v808_v33 = vrot.slane %v806_v24, 5  ;;  %v2934_v23 = vld [vmem:[%s4206_s27 + $0xc] sm:$0x1] }
  0xb9   : > { %3351 = vmatprep.subr.bf16.mxu0 %v3647_v45  ;;  %v733_v36 = vor.u32 %v732_v27, %v729_v26  ;;  %v2884_v39 = vcombine.low %v1576_v30, %v1590_v35  ;;  %v785_v26 = vrot.slane %v783_v18, 4  ;;  %v788_v27 = vrot.slane %v786_v19, 5  ;;  %v3666_v35 = vld [vmem:[#allocation5 + $0xd0] sm:$0xff]   ;;  %v3679_v13 = vld [vmem:[#allocation5 + $0x1f8] sm:$0xff]   ;;  %v3686_v18 = vld [vmem:[#allocation5 + $0x208] sm:$0xff]  }
  0xba   : > { %3224 = vmatmul.mubr.bf16.gmra.mrb[4].mxu1 %v3657_v51  ;;  %v794_v30 = vrot.slane %v792_v21, 5  ;;  %v3687_v19 = vld [vmem:[#allocation7 + $0x8] sm:$0xff]   ;;  %v3698_v21 = vld [vmem:[%s4206_s27 + $0x70] ss:$8 sps:$4 sm:$0xff]  }
  0xbb   : > { %3232 = vmatpush3.bf16.msra.mxu1 %v3646_v42  ;;  %v712_v42 = vld [vmem:[%s4206_s27 + $0x14] sm:$0x1]  ;;  %v734_v43 = vrot.slane %v733_v36, 4  ;;  %3344 = vmatmul.mubr.bf16.gmra.mrb[4].mxu0 %v2884_v39  ;;  %v789_v36 = vor.u32 %v788_v27, %v785_v26  ;;  %v2935_v24 = vld [vmem:[%s4206_s27 + $0x10] sm:$0xf]  ;;  %v2104_v26 = vshrl.u32 %v2933_v22, 16 }
  0xbc   : > { %3352 = vmatpush3.bf16.msra.mxu0 %v3647_v45  ;;  %3233 = vmatprep.subr.bf16.mxu1 %v3648_v0  ;;  %v714_v45 = vld [vmem:[%s4206_s27 + $0x1c] sm:$0x1]  ;;  %v764_v49 = vshll.u32 %v712_v42, 16  ;;  %v2107_v27 = vshll.u32 %v2933_v22, 16  ;;  %v2121_v31 = vshll.u32 %v2935_v24, 16 }
  0xbd   : > { %3353 = vmatprep.subr.bf16.mxu0 %v3649_v5  ;;  %v739_v51 = vsel %vm4232_vm2, %v734_v43, %v738_v28  ;;  %3363 = vmatprep.mubr.bf16.mxu0 %v3661_v37  ;;  %v778_v60 = vshll.u32 %v714_v45, 16  ;;  %v720_v28 = vld [vmem:[%s4206_s27 + $0x34] sm:$0x1]  ;;  %v811_v37 = vshrl.u32 %v719_v25, 16  ;;  %v790_v45 = vrot.slane %v789_v36, 4 }
  0xbe   : > { %v2805_v61 = vcombine.low %v739_v51, %v753_v57  ;;  %v766_v62 = vrot.slane %v764_v49, 5  ;;  %v820_v39 = vshll.u32 %v720_v28, 16  ;;  %v804_v49 = vrot.slane %v803_v41, 4 }
  0xbf   : > { %3234 = vmatpush3.bf16.msra.mxu1 %v3648_v0  ;;  %v761_v0 = vor.u32 %v760_v58, %v757_v52  ;;  %v780_v3 = vrot.slane %v778_v60, 5  ;;  %v813_v46 = vrot.slane %v811_v37, 4  ;;  %v795_v53 = vsel %vm4232_vm2, %v790_v45, %v794_v30  ;;  %v3668_v60 = vld [vmem:[#allocation5 + $0xd8] sm:$0xff]   ;;  %v3691_v30 = vld [vmem:[#allocation7 + $0x10] sm:$0xff]   ;;  %v3689_v37 = vld [vmem:[%s4206_s27 + $0xc0] ss:$8 sps:$4 sm:$0xff]  }
  0xc0   : > { %3354 = vmatpush3.bf16.msra.mxu0 %v3649_v5  ;;  %3235 = vmatprep.subr.bf16.mxu1 %v3650_v15  ;;  %v776_v5 = vrot.slane %v775_v1, 4  ;;  %v822_v48 = vrot.slane %v820_v39, 5  ;;  %v809_v57 = vsel %vm4232_vm2, %v804_v49, %v808_v33  ;;  %v3670_v1 = vld [vmem:[#allocation5 + $0xe0] sm:$0xff]   ;;  %v2113_v28 = vshll.u32 %v2934_v23, 16  ;;  %v3690_v33 = vld [vmem:[#allocation5 + $0x210] sm:$0xff]  }
  0xc1   : > { %3355 = vmatprep.subr.bf16.mxu0 %v3651_v29  ;;  %3243 = vmatprep.mubr.bf16.mxu1 %v2805_v61  ;;  %v762_v2 = vrot.slane %v761_v0, 4  ;;  %v2807_v61 = vcombine.low %v795_v53, %v809_v57  ;;  %v3699_v39 = vld [vmem:[%s4206_s27 + $0x80] ss:$8 sps:$4 sm:$0xff]   ;;  %v3701_v23 = vld [vmem:[#allocation7 + $0x30] sm:$0xff]  }
  0xc2   : > { %v781_v9 = vsel %vm4232_vm2, %v776_v5, %v780_v3  ;;  %v2115_v41 = vrot.slane %v2113_v28, 5  ;;  %v3700_v28 = vld [vmem:[#allocation5 + $0x230] sm:$0xff]  }
  0xc3   : > { %3236 = vmatpush3.bf16.msra.mxu1 %v3650_v15  ;;  %v767_v8 = vsel %vm4232_vm2, %v762_v2, %v766_v62  ;;  %v3664_v15 = vld [vmem:[#allocation5 + $0xc8] sm:$0xff]  }
  0xc4   : > { %3356 = vmatpush3.bf16.msra.mxu0 %v3651_v29  ;;  %3237 = vmatprep.subr.bf16.mxu1 %v3652_v34  ;;  %v2806_v14 = vcombine.low %v767_v8, %v781_v9  ;;  %v721_v29 = vld [vmem:[%s4206_s27 + $0x38] sm:$0xf]  ;;  %v3672_v8 = vld [vmem:[#allocation5 + $0xe8] sm:$0xff]  }
  0xc5   : > { %3357 = vmatprep.subr.bf16.mxu0 %v3653_v38  ;;  %v825_v42 = vshrl.u32 %v721_v29, 16  ;;  %v828_v43 = vshll.u32 %v721_v29, 16  ;;  %v3673_v9 = vld [vmem:[#allocation5 + $0x1e8] sm:$0xff]   ;;  %v2118_v29 = vshrl.u32 %v2935_v24, 16 }
  0xc7   : > { %3238 = vmatpush3.bf16.msra.mxu1 %v3652_v34  ;;  %v722_v34 = vld [vmem:[%s4206_s27 + $0x3c] sm:$0x1]  ;;  %v827_v50 = vrot.slane %v825_v42, 4  ;;  %v830_v51 = vrot.slane %v828_v43, 5  ;;  %v2120_v36 = vrot.slane %v2118_v29, 4 }
  0xc8   : > { %3358 = vmatpush3.bf16.msra.mxu0 %v3653_v38  ;;  %3239 = vmatprep.subr.bf16.mxu1 %v3655_v54  ;;  %v814_v38 = vshll.u32 %v719_v25, 16  ;;  %v834_v44 = vshll.u32 %v722_v34, 16  ;;  %v2936_v25 = vld [vmem:[%s4206_s27 + $0x14] sm:$0x1]  ;;  %v2106_v34 = vrot.slane %v2104_v26, 4  ;;  %v3693_v43 = vld [vmem:[#allocation7 + $0x18] sm:$0xff]  }
  0xc9   : > { %3359 = vmatprep.subr.bf16.mxu0 %v3656_v56  ;;  %v831_v58 = vor.u32 %v830_v51, %v827_v50  ;;  %v2127_v32 = vshll.u32 %v2936_v25, 16  ;;  %v2937_v42 = vld [vmem:[%s4206_s27 + $0x18] sm:$0xf]  ;;  %v2941_v51 = vld [vmem:[%s4206_s27 + $0x28] sm:$0xf] }
  0xca   : > { %v816_v47 = vrot.slane %v814_v38, 5  ;;  %v836_v52 = vrot.slane %v834_v44, 5  ;;  %v2123_v38 = vrot.slane %v2121_v31, 5  ;;  %v2132_v50 = vshrl.u32 %v2937_v42, 16 }
  0xcb   : > { %3240 = vmatpush3.bf16.msra.mxu1 %v3655_v54  ;;  %v832_v0 = vrot.slane %v831_v58, 4  ;;  %v2129_v45 = vrot.slane %v2127_v32, 5  ;;  %v3695_v58 = vld [vmem:[#allocation7 + $0x20] sm:$0xff]  }
  0xcc   : > { %3360 = vmatpush3.bf16.msra.mxu0 %v3656_v56  ;;  %3241 = vmatprep.subr.bf16.mxu1 %v3658_v4  ;;  %v817_v54 = vor.u32 %v816_v47, %v813_v46  ;;  %v3675_v56 = vld [vmem:[%s4206_s27 + $0x28] ss:$8 sps:$4 sm:$0xff]   ;;  %v2124_v44 = vor.u32 %v2123_v38, %v2120_v36  ;;  %v2939_v46 = vld [vmem:[%s4206_s27 + $0x20] sm:$0xf]  ;;  %v3692_v47 = vld [vmem:[#allocation5 + $0x218] sm:$0xff]  }
  0xcd   : > { %3361 = vmatprep.subr.bf16.mxu0 %v3659_v6  ;;  %v837_v3 = vsel %vm4232_vm2, %v832_v0, %v836_v52  ;;  %v2943_v52 = vld [vmem:[%s4206_s27 + $0x30] sm:$0xf]  ;;  %v2149_v57 = vshll.u32 %v2939_v46, 16  ;;  %v2163_v0 = vshll.u32 %v2941_v51, 16 }
  0xce   : > { %v818_v62 = vrot.slane %v817_v54, 4  ;;  %v2125_v49 = vrot.slane %v2124_v44, 4  ;;  %v2135_v54 = vshll.u32 %v2937_v42, 16 }
  0xcf   : > { %3242 = vmatpush3.bf16.msra.mxu1 %v3658_v4  ;;  %v3680_v4 = vld [vmem:[%s4206_s27 + $0x90] ss:$8 sps:$4 sm:$0xff]  }
  0xd0   : > { %3362 = vmatpush3.bf16.msra.mxu0 %v3659_v6  ;;  %3251 = vmatprep.subr.bf16.mxu1 %v3660_v7  ;;  %v823_v2 = vsel %vm4232_vm2, %v818_v62, %v822_v48  ;;  %v3682_v6 = vld [vmem:[%s4206_s27 + $0x50] ss:$8 sps:$4 sm:$0xff]  }
  0xd1   : > { %3371 = vmatprep.subr.bf16.mxu0 %v3662_v10  ;;  %v2808_v5 = vcombine.low %v823_v2, %v837_v3  ;;  %v3704_v62 = vld [vmem:[%s4206_s27 + $0xd8] ss:$8 sps:$4 sm:$0xff]   ;;  %v2177_v2 = vshll.u32 %v2943_v52, 16  ;;  %v3696_v3 = vld [vmem:[#allocation5 + $0x228] sm:$0xff]  }
  0xd2   : > { %3244 = vmatmul.mubr.bf16.vlgmr.msra.gmra.mrb[0].mxu1 %v2806_v14  ;;  %v3681_v14 = vld [vmem:[%s4206_s27 + $0xa0] ss:$8 sps:$4 sm:$0xff]  }
  0xd3   : > { %3252 = vmatpush3.bf16.msra.mxu1 %v3660_v7  ;;  %3364 = vmatmul.mubr.bf16.vlgmr.msra.gmra.mrb[0].mxu0 %v3663_v11  ;;  %v3671_v7 = vld [vmem:[#allocation5 + $0x1e0] sm:$0xff]   ;;  %v3676_v11 = vld [vmem:[#allocation5 + $0x1f0] sm:$0xff]  }
  0xd4   : > { %3372 = vmatpush3.bf16.msra.mxu0 %v3662_v10  ;;  %3253 = vmatprep.subr.bf16.mxu1 %v3664_v15  ;;  %v3674_v10 = vld [vmem:[#allocation5 + $0xf0] sm:$0xff]  }
  0xd5   : > { %3373 = vmatprep.subr.bf16.mxu0 %v3665_v20  ;;  %3367 = vmatprep.mubr.bf16.mxu0 %v3675_v56  ;;  %v2146_v56 = vshrl.u32 %v2939_v46, 16 }
  0xd6   : > { %3247 = vmatprep.mubr.bf16.mxu1 %v2807_v61 }
  0xd7   : > { %3254 = vmatpush3.bf16.msra.mxu1 %v3664_v15  ;;  %v3685_v15 = vld [vmem:[#allocation7] sm:$0xff]  }
  0xd8   : > { %3374 = vmatpush3.bf16.msra.mxu0 %v3665_v20  ;;  %3255 = vmatprep.subr.bf16.mxu1 %v3666_v35  ;;  %v3688_v20 = vld [vmem:[%s4206_s27 + $0xb0] ss:$8 sps:$4 sm:$0xff]  }
  0xd9   : > { %3375 = vmatprep.subr.bf16.mxu0 %v3667_v40 }
  0xda   : > { %3248 = vmatmul.mubr.bf16.gmra.mrb[4].mxu1 %v2808_v5  ;;  %v2134_v5 = vrot.slane %v2132_v50, 4 }
  0xdb   : > { %3256 = vmatpush3.bf16.msra.mxu1 %v3666_v35  ;;  %3368 = vmatmul.mubr.bf16.gmra.mrb[4].mxu0 %v3677_v59  ;;  %v2109_v35 = vrot.slane %v2107_v27, 5  ;;  %v2130_v59 = vsel %vm4232_vm2, %v2125_v49, %v2129_v45 }
  0xdc   : > { %3376 = vmatpush3.bf16.msra.mxu0 %v3667_v40  ;;  %3257 = vmatprep.subr.bf16.mxu1 %v3668_v60 }
  0xdd   : > { %3377 = vmatprep.subr.bf16.mxu0 %v3669_v63  ;;  %3387 = vmatprep.mubr.bf16.mxu0 %v3682_v6  ;;  %v2110_v40 = vor.u32 %v2109_v35, %v2106_v34  ;;  %v2137_v6 = vrot.slane %v2135_v54, 5  ;;  %v3703_v34 = vld [vmem:[#allocation7 + $0x38] sm:$0xff]  }
  0xde   : > { %3267 = vmatprep.mubr.bf16.mxu1 %v3680_v4  ;;  %v3697_v4 = vld [vmem:[#allocation7 + $0x28] sm:$0xff]  }
  0xdf   : > { %3258 = vmatpush3.bf16.msra.mxu1 %v3668_v60  ;;  %v2111_v48 = vrot.slane %v2110_v40, 4  ;;  %v3694_v60 = vld [vmem:[#allocation5 + $0x220] sm:$0xff]  }
  0xe0   : > { %3378 = vmatpush3.bf16.msra.mxu0 %v3669_v63  ;;  %3259 = vmatprep.subr.bf16.mxu1 %v3670_v1  ;;  %v2160_v63 = vshrl.u32 %v2941_v51, 16 }
  0xe1   : > { %3379 = vmatprep.subr.bf16.mxu0 %v3671_v7  ;;  %v2116_v53 = vsel %vm4232_vm2, %v2111_v48, %v2115_v41  ;;  %v2948_v48 = vld [vmem:[%s4206_s27 + $0x44] sm:$0x1] }
  0xe2   : > { %v2949_v61 = vcombine.low %v2116_v53, %v2130_v59  ;;  %v2211_v54 = vshll.u32 %v2948_v48, 16 }
  0xe3   : > { %3260 = vmatpush3.bf16.msra.mxu1 %v3670_v1  ;;  %v2174_v1 = vshrl.u32 %v2943_v52, 16 }
  0xe4   : > { %3380 = vmatpush3.bf16.msra.mxu0 %v3671_v7  ;;  %3261 = vmatprep.subr.bf16.mxu1 %v3672_v8  ;;  %v2148_v7 = vrot.slane %v2146_v56, 4 }
  0xe5   : > { %3381 = vmatprep.subr.bf16.mxu0 %v3673_v9 }
  0xe7   : > { %3262 = vmatpush3.bf16.msra.mxu1 %v3672_v8  ;;  %v2151_v8 = vrot.slane %v2149_v57, 5 }
  0xe8   : > { %3382 = vmatpush3.bf16.msra.mxu0 %v3673_v9  ;;  %3263 = vmatprep.subr.bf16.mxu1 %v3674_v10  ;;  %v2938_v9 = vld [vmem:[%s4206_s27 + $0x1c] sm:$0x1] }
  0xe9   : > { %3383 = vmatprep.subr.bf16.mxu0 %v3676_v11 }
  0xeb   : > { %3264 = vmatpush3.bf16.msra.mxu1 %v3674_v10  ;;  %v2940_v10 = vld [vmem:[%s4206_s27 + $0x24] sm:$0x1] }
  0xec   : > { %3384 = vmatpush3.bf16.msra.mxu0 %v3676_v11  ;;  %3265 = vmatprep.subr.bf16.mxu1 %v3678_v12  ;;  %v2945_v11 = vld [vmem:[%s4206_s27 + $0x38] sm:$0xf]  ;;  %v2155_v22 = vshll.u32 %v2940_v10, 16 }
  0xed   : > { %3385 = vmatprep.subr.bf16.mxu0 %v3679_v13  ;;  %v2188_v24 = vshrl.u32 %v2945_v11, 16  ;;  %v2191_v25 = vshll.u32 %v2945_v11, 16 }
  0xee   : > { %v2157_v38 = vrot.slane %v2155_v22, 5 }
  0xef   : > { %3266 = vmatpush3.bf16.msra.mxu1 %v3678_v12  ;;  %v2162_v12 = vrot.slane %v2160_v63, 4  ;;  %v2190_v40 = vrot.slane %v2188_v24, 4  ;;  %v2193_v41 = vrot.slane %v2191_v25, 5  ;;  %v2213_v63 = vrot.slane %v2211_v54, 5 }
  0xf0   : > { %3386 = vmatpush3.bf16.msra.mxu0 %v3679_v13  ;;  %3299 = vmatprep.subr.bf16.mxu1 %v3685_v15  ;;  %v2165_v13 = vrot.slane %v2163_v0, 5  ;;  %v3705_v0 = vld [vmem:[%s4206_s27 + $0xe8] ss:$8 sps:$4 sm:$0xff]  }
  0xf1   : > { %3395 = vmatprep.subr.bf16.mxu0 %v3683_v16  ;;  %v2194_v52 = vor.u32 %v2193_v41, %v2190_v40  ;;  %v3994_v41 = vmov (!%p4641_p11), 0.0  }
  0xf2   : > { %3268 = vmatmul.mubr.bf16.vlgmr.msra.gmra.mrb[0].mxu1 %v3681_v14  ;;  %v2176_v14 = vrot.slane %v2174_v1, 4  ;;  %v2166_v29 = vor.u32 %v2165_v13, %v2162_v12  ;;  %v3706_v1 = vld [vmem:[%s4206_s27 + $0xf8] ss:$8 sps:$4 sm:$0xff]   ;;  %2412 = vst [vmem:[#allocation11] sm:$0xff] (!%p4641_p11), %v3994_v41  ;;  %2413 = vst [vmem:[#allocation12] sm:$0xff] (!%p4641_p11), %v3994_v41 }
  0xf3   : > { %3388 = vmatmul.mubr.bf16.vlgmr.msra.gmra.mrb[0].mxu0 %v3684_v17  ;;  %3300 = vmatpush3.bf16.msra.mxu1 %v3685_v15  ;;  %v2179_v15 = vrot.slane %v2177_v2, 5  ;;  %v2942_v17 = vld [vmem:[%s4206_s27 + $0x2c] sm:$0x1] }
  0xf4   : > { %3396 = vmatpush3.bf16.msra.mxu0 %v3683_v16  ;;  %3301 = vmatprep.subr.bf16.mxu1 %v3687_v19  ;;  %v2947_v16 = vld [vmem:[%s4206_s27 + $0x40] sm:$0xf]  ;;  %v2167_v44 = vrot.slane %v2166_v29, 4 }
  0xf5   : > { %3397 = vmatprep.subr.bf16.mxu0 %v3686_v18  ;;  %3271 = vmatprep.mubr.bf16.mxu1 %v3688_v20  ;;  %v2141_v20 = vshll.u32 %v2938_v9, 16  ;;  %v2202_v26 = vshrl.u32 %v2947_v16, 16  ;;  %v2205_v27 = vshll.u32 %v2947_v16, 16  ;;  %v2180_v31 = vor.u32 %v2179_v15, %v2176_v14 }
  0xf6   : > { %3391 = vmatprep.mubr.bf16.mxu0 %v3698_v21  ;;  %v2152_v21 = vor.u32 %v2151_v8, %v2148_v7 }
  0xf7   : > { %3302 = vmatpush3.bf16.msra.mxu1 %v3687_v19  ;;  %v2138_v19 = vor.u32 %v2137_v6, %v2134_v5  ;;  %v2143_v36 = vrot.slane %v2141_v20, 5  ;;  %v2204_v42 = vrot.slane %v2202_v26, 4  ;;  %v2181_v46 = vrot.slane %v2180_v31, 4  ;;  %v3707_v5 = vld [vmem:[%s4206_s27 + $0x108] ss:$8 sps:$4 sm:$0xff]  }
  0xf8   : > { %3398 = vmatpush3.bf16.msra.mxu0 %v3686_v18  ;;  %3303 = vmatprep.subr.bf16.mxu1 %v3691_v30  ;;  %v2944_v18 = vld [vmem:[%s4206_s27 + $0x34] sm:$0x1] }
  0xf9   : > { %3399 = vmatprep.subr.bf16.mxu0 %v3690_v33  ;;  %v2183_v32 = vshll.u32 %v2944_v18, 16  ;;  %v2139_v35 = vrot.slane %v2138_v19, 4 }
  0xfa   : > { %3272 = vmatmul.mubr.bf16.gmra.mrb[4].mxu1 %v3689_v37  ;;  %v2153_v37 = vrot.slane %v2152_v21, 4 }
  0xfb   : > { %3304 = vmatpush3.bf16.msra.mxu1 %v3691_v30  ;;  %3392 = vmatmul.mubr.bf16.gmra.mrb[4].mxu0 %v3699_v39  ;;  %v2169_v30 = vshll.u32 %v2942_v17, 16  ;;  %v2946_v39 = vld [vmem:[%s4206_s27 + $0x3c] sm:$0x1]  ;;  %v2144_v49 = vsel %vm4232_vm2, %v2139_v35, %v2143_v36 }
  0xfc   : > { %3400 = vmatpush3.bf16.msra.mxu0 %v3690_v33  ;;  %3305 = vmatprep.subr.bf16.mxu1 %v3693_v43  ;;  %v3702_v33 = vld [vmem:[#allocation5 + $0x238] sm:$0xff]   ;;  %v2197_v50 = vshll.u32 %v2946_v39, 16  ;;  %v2158_v51 = vsel %vm4232_vm2, %v2153_v37, %v2157_v38 }
  0xfd   : > { %3401 = vmatprep.subr.bf16.mxu0 %v3692_v47  ;;  %3315 = vmatprep.mubr.bf16.mxu1 %v3704_v62  ;;  %v2171_v45 = vrot.slane %v2169_v30, 5 }
  0xfe   : > { %3411 = vmatprep.mubr.bf16.mxu0 %v2949_v61  ;;  %v2199_v59 = vrot.slane %v2197_v50, 5  ;;  %v2195_v61 = vrot.slane %v2194_v52, 4 }
  0xff   : > { %3306 = vmatpush3.bf16.msra.mxu1 %v3693_v43  ;;  %v2207_v43 = vrot.slane %v2205_v27, 5  ;;  %v2172_v56 = vsel %vm4232_vm2, %v2167_v44, %v2171_v45 }
 0x100   : > { %3402 = vmatpush3.bf16.msra.mxu0 %v3692_v47  ;;  %3307 = vmatprep.subr.bf16.mxu1 %v3695_v58  ;;  %v2185_v47 = vrot.slane %v2183_v32, 5  ;;  %v2200_v2 = vsel %vm4232_vm2, %v2195_v61, %v2199_v59 }
 0x101   : > { %3403 = vmatprep.subr.bf16.mxu0 %v3694_v60  ;;  %v2208_v53 = vor.u32 %v2207_v43, %v2204_v42 }
 0x102   : > { %v2186_v57 = vsel %vm4232_vm2, %v2181_v46, %v2185_v47 }
 0x103   : > { %3308 = vmatpush3.bf16.msra.mxu1 %v3695_v58  ;;  %v2950_v58 = vcombine.low %v2144_v49, %v2158_v51  ;;  %v2209_v62 = vrot.slane %v2208_v53, 4 }
 0x104   : > { %3404 = vmatpush3.bf16.msra.mxu0 %v3694_v60  ;;  %3309 = vmatprep.subr.bf16.mxu1 %v3697_v4  ;;  %v2951_v60 = vcombine.low %v2172_v56, %v2186_v57 }
 0x105   : > { %3405 = vmatprep.subr.bf16.mxu0 %v3696_v3 }
 0x107   : > { %3310 = vmatpush3.bf16.msra.mxu1 %v3697_v4 }
 0x108   : > { %3406 = vmatpush3.bf16.msra.mxu0 %v3696_v3  ;;  %3311 = vmatprep.subr.bf16.mxu1 %v3701_v23  ;;  %v2214_v3 = vsel %vm4232_vm2, %v2209_v62, %v2213_v63 }
 0x109   : > { %3407 = vmatprep.subr.bf16.mxu0 %v3700_v28  ;;  %v2952_v4 = vcombine.low %v2200_v2, %v2214_v3 }
 0x10b   : > { %3312 = vmatpush3.bf16.msra.mxu1 %v3701_v23 }
 0x10c   : > { %3408 = vmatpush3.bf16.msra.mxu0 %v3700_v28  ;;  %3313 = vmatprep.subr.bf16.mxu1 %v3703_v34 }
 0x10d   : > { %3409 = vmatprep.subr.bf16.mxu0 %v3702_v33 }
 0x10f   : > { %3314 = vmatpush3.bf16.msra.mxu1 %v3703_v34 }
 0x110   : > { %3410 = vmatpush3.bf16.msra.mxu0 %v3702_v33 }
 0x112   : > { %3316 = vmatmul.mubr.bf16.vlgmr.msra.gmra.mrb[8].mxu1 %v3705_v0 }
 0x113   : > { %3412 = vmatmul.mubr.bf16.vlgmr.msra.gmra.mrb[0].mxu0 %v2950_v58  ;;  %3319 = vmatprep.mubr.bf16.mxu1 %v3706_v1 }
 0x114   : > { %3415 = vmatprep.mubr.bf16.mxu0 %v2951_v60 }
 0x11a   : > { %3320 = vmatmul.mubr.bf16.gmra.mrb[12].mxu1 %v3707_v5 }
 0x11b   : > { %3416 = vmatmul.mubr.bf16.gmra.mrb[4].mxu0 %v2952_v4 }
 0x1c5   : > { %v3269_v6 = vpop.f32.mrb[0].mxu1 }
 0x1c6   : > { %v1124_v7 = vpop.f32.mrb[1].mxu1 }
 0x1c7   : > { %v3270_v8 = vpop.f32.mrb[2].mxu1 }
 0x1c8   : > { %v1127_v9 = vpop.f32.mrb[3].mxu1 }
 0x1cd   : > { %v3273_v10 = vpop.f32.mrb[4].mxu1 }
 0x1ce   : > { %v1140_v11 = vpop.f32.mrb[5].mxu1 }
 0x1cf   : > { %v3274_v12 = vpop.f32.mrb[6].mxu1 }
 0x1d0   : > { %v1143_v13 = vpop.f32.mrb[7].mxu1 }
 0x1e5   : > { %v4346_v14 = vpop.f32.mrb[8].mxu1 }
 0x1e6   : > { %v3413_v15 = vpop.f32.mrb[0].mxu0  ;;  %v4348_v16 = vpop.f32.mrb[9].mxu1 }
 0x1e7   : > { %v3419_v55 = vadd.f32 %v3413_v15, %v3269_v6  ;;  %v2330_v17 = vpop.f32.mrb[1].mxu0  ;;  %v4350_v18 = vpop.f32.mrb[10].mxu1 }
 0x1e8   : > { %v3420_v19 = vadd.f32 %v2330_v17, %v1124_v7  ;;  %v3414_v20 = vpop.f32.mrb[2].mxu0  ;;  %v4352_v21 = vpop.f32.mrb[11].mxu1 }
 0x1e9   : > { %v3421_v22 = vadd.f32 %v3414_v20, %v3270_v8  ;;  %v2333_v23 = vpop.f32.mrb[3].mxu0 }
 0x1ea   : > { %v3422_v24 = vadd.f32 %v2333_v23, %v1127_v9 }
 0x1eb   : > { %v3021_v25 = vpack.c.bf16 %v3421_v22, %v3419_v55 }
 0x1ec   : > { %v3016_v26 = vpack.c.bf16 %v3422_v24, %v3420_v19 }
 0x1ed   : > { %3053 = vst [vmem:[%s4356_s16 + $0x8] sm:$0xff] %v3021_v25   ;;  %v4359_v27 = vpop.f32.mrb[12].mxu1 }
 0x1ee   : > { %3017 = vst [vmem:[%s4356_s16] sm:$0xff] %v3016_v26   ;;  %v3417_v28 = vpop.f32.mrb[4].mxu0  ;;  %v4362_v29 = vpop.f32.mrb[13].mxu1 }
 0x1ef   : > { %v3423_v30 = vadd.f32 %v3417_v28, %v3273_v10  ;;  %v2346_v31 = vpop.f32.mrb[5].mxu0  ;;  %v4364_v32 = vpop.f32.mrb[14].mxu1 }
 0x1f0   : > { %v3424_v33 = vadd.f32 %v2346_v31, %v1140_v11  ;;  %v3418_v34 = vpop.f32.mrb[6].mxu0  ;;  %v4366_v35 = vpop.f32.mrb[15].mxu1  ;;  %2411 = sbr.rel (%p4641_p11) target bundleno = 503 (0x1f7), region = 48 }
 0x1f1   : > { %v3425_v36 = vadd.f32 %v3418_v34, %v3274_v12  ;;  %v2349_v37 = vpop.f32.mrb[7].mxu0 }
 0x1f2   : > { %v3426_v38 = vadd.f32 %v2349_v37, %v1143_v13 }
 0x1f3   : > { %v3031_v39 = vpack.c.bf16 %v3425_v36, %v3423_v30 }
 0x1f4   : > { %v3026_v40 = vpack.c.bf16 %v3426_v38, %v3424_v33 }
 0x1f5   : > { %3055 = vst [vmem:[%s4356_s16 + $0x18] sm:$0xff] %v3031_v39  }
 0x1f6   : > { %3054 = vst [vmem:[%s4356_s16 + $0x10] sm:$0xff] %v3026_v40  }
 0x1f7 PF: > { %v2415_v42 = vadd.f32 %v3422_v24, %v3420_v19  ;;  %v2425_v43 = vmul.f32 %v3420_v19, %v3420_v19  ;;  %v2426_v44 = vmul.f32 %v3422_v24, %v3422_v24  ;;  %v2427_v45 = vmul.f32 %v3419_v55, %v3419_v55  ;;  %v2414_v2 = vld [vmem:[#allocation11] sm:$0xff]  ;;  %v2424_v5 = vld [vmem:[#allocation12] sm:$0xff]  ;;  %p4642_p12 = scmp.ne.s32.totalorder %s4070_s9, 0 }
 0x1f8   : > { %v2428_v47 = vmul.f32 %v3421_v22, %v3421_v22  ;;  %v3036_v49 = vpack.c.bf16 %v4352_v21, %v4348_v16  ;;  %v3041_v50 = vpack.c.bf16 %v4350_v18, %v4346_v14  ;;  %v3046_v51 = vpack.c.bf16 %v4366_v35, %v4362_v29 }
 0x1f9   : > { %v2416_v46 = vadd.f32 %v3419_v55, %v2415_v42  ;;  %v2433_v48 = vadd.f32 %v2426_v44, %v2425_v43  ;;  %v3051_v52 = vpack.c.bf16 %v4364_v32, %v4359_v27  ;;  %v2429_v54 = vmul.f32 %v3424_v33, %v3424_v33 }
 0x1fa   : > { %3037 = vst [vmem:[%s4372_s19] sm:$0xff] %v3036_v49   ;;  %3056 = vst [vmem:[%s4372_s19 + $0x8] sm:$0xff] %v3041_v50   ;;  %v2430_v58 = vmul.f32 %v3426_v38, %v3426_v38  ;;  %v2431_v61 = vmul.f32 %v3423_v30, %v3423_v30  ;;  %v2432_v0 = vmul.f32 %v3425_v36, %v3425_v36  ;;  %v3995_v9 = vmov (!%p4642_p12), 0.0  }
 0x1fb   : > { %v2417_v53 = vadd.f32 %v3421_v22, %v2416_v46  ;;  %v2434_v56 = vadd.f32 %v2433_v48, %v2427_v45  ;;  %3057 = vst [vmem:[%s4372_s19 + $0x10] sm:$0xff] %v3046_v51   ;;  %3058 = vst [vmem:[%s4372_s19 + $0x18] sm:$0xff] %v3051_v52  }
 0x1fc   : > { %2485 = vst [vmem:[#allocation14] sm:$0xff] (!%p4642_p12), %v3995_v9  ;;  %2486 = vst [vmem:[#allocation15] sm:$0xff] (!%p4642_p12), %v3995_v9 }
 0x1fd   : > { %v2418_v57 = vadd.f32 %v3424_v33, %v2417_v53  ;;  %v2435_v59 = vadd.f32 %v2434_v56, %v2428_v47 }
 0x1ff   : > { %v2419_v60 = vadd.f32 %v3426_v38, %v2418_v57  ;;  %v2436_v62 = vadd.f32 %v2435_v59, %v2429_v54 }
 0x201   : > { %v2420_v63 = vadd.f32 %v3423_v30, %v2419_v60  ;;  %v2437_v1 = vadd.f32 %v2436_v62, %v2430_v58 }
 0x203   : > { %v2421_v3 = vadd.f32 %v3425_v36, %v2420_v63  ;;  %v2438_v4 = vadd.f32 %v2437_v1, %v2431_v61  ;;  %2484 = sbr.rel (%p4642_p12) target bundleno = 522 (0x20a), region = 52 }
 0x205   : > { %v2422_v6 = vadd.f32 %v2421_v3, %v2414_v2  ;;  %v2439_v7 = vadd.f32 %v2438_v4, %v2432_v0 }
 0x207   : > { %2423 = vst [vmem:[#allocation11] sm:$0xff] %v2422_v6  ;;  %v2440_v8 = vadd.f32 %v2439_v7, %v2424_v5 }
 0x209   : > { %2441 = vst [vmem:[#allocation12] sm:$0xff] %v2440_v8 }
 0x20a PF: > { %v2488_v10 = vadd.f32 %v4352_v21, %v4348_v16  ;;  %v2498_v11 = vmul.f32 %v4348_v16, %v4348_v16  ;;  %v2499_v12 = vmul.f32 %v4352_v21, %v4352_v21  ;;  %v2500_v13 = vmul.f32 %v4346_v14, %v4346_v14  ;;  %s2520_s18 = sand.u32 1, %s4070_s9   ;;  %s3011_s12 = sshll.u32 %s4070_s9, 9 }
 0x20b   : > { %v2501_v55 = vmul.f32 %v4350_v18, %v4350_v18  ;;  %s4408_s11 = scalar_lea.hbm %s4608_s4, %s3011_s12  ;;  %s2550_s26 = sshll.u32 %s4372_s19, 4  ;;  %v2502_v19 = vmul.f32 %v4362_v29, %v4362_v29  ;;  %s4414_s26 = int_to_ptr.vmem [resolvable:$true] %s2550_s26 }
 0x20c   : > { %v2489_v15 = vadd.f32 %v4346_v14, %v2488_v10  ;;  %v2506_v17 = vadd.f32 %v2499_v12, %v2498_v11  ;;  %s3996_s14 = smov [#allocation12]   ;;  %s4418_s22 = scalar_lea.sflag [#allocation10], %s2520_s18 }
 0x20d   : > { %s4416_s24 = sshll.u32 %s3996_s14, 4  ;;  %s3764_s10 = scalar_lea.vmem %s4414_s26, 512  ;;  %s2576_s24 = int_to_ptr.vmem [resolvable:$true] %s4416_s24 }
 0x20e   : > { %v2490_v16 = vadd.f32 %v4350_v18, %v2489_v15  ;;  %v2507_v20 = vadd.f32 %v2506_v17, %v2500_v13  ;;  %p3765_p13 = scmp.ne.s32.totalorder %s4414_s26, %s3764_s10  ;;  %p4643_p1 = scmp.ne.s32.totalorder %s4629_s17, 0 }
 0x20f   : > { %s3997_s20 = smov [#allocation9]  }
 0x210   : > { %p3766_p3 = pnand %p3765_p13, %p4643_p1  ;;  %s3768_s21 = sshll.u32 %s3997_s20, 4  ;;  %s3769_s21 = int_to_ptr.vmem [resolvable:$false] %s3768_s21 }
 0x211   : > { %s3770_s27 = scalar_lea.vmem %s3769_s21, 1024  ;;  %p3771_p10 = scmp.lt.s32.totalorder %s4414_s26, %s3769_s21 }
 0x212   : > { %p3767_p9 = pneg %p3766_p3  ;;  %p3772_p2 = scmp.lt.s32.totalorder %s3770_s27, %s3764_s10 }
 0x214   : > { %p3773_p8 = por %p3772_p2, %p3771_p10 }
 0x216   : > { %p3774_p0 = pnand %p3773_p8, %p3767_p9 }
 0x218   : > { %3777 = shalt.err (!%p3774_p0)
}
 0x219   : > { %s3778_s15 = scalar_lea.hbm %s4408_s11, 512  ;;  %s3782_s13 = scalar_lea.hbm %s4608_s4, 1024 }
 0x21a   : > { %p3779_p5 = scmp.ne.s32.totalorder %s4408_s11, %s3778_s15  ;;  %p3783_p11 = scmp.lt.u32.totalorder %s4408_s11, %s4608_s4 }
 0x21b   : > { %p3784_p12 = scmp.lt.u32.totalorder %s3782_s13, %s3778_s15  ;;  %p3786_p3 = scmp.lt.u32.totalorder %s3778_s15, %s4408_s11 }
 0x21c   : > { %p3780_p6 = pnand %p3779_p5, %p4643_p1 }
 0x21d   : > { %p3785_p13 = por %p3784_p12, %p3783_p11 }
 0x21e   : > { %p3781_p7 = pneg %p3780_p6 }
 0x21f   : > { %p3787_p9 = por %p3786_p3, %p3785_p13 }
 0x221   : > { %p3788_p10 = pnand %p3787_p9, %p3781_p7 }
 0x223   : > { %3791 = shalt.err (!%p3788_p10)
}
 0x224   : > { %s3998_s10 = smov 64   ;;  %s3999_s20 = smov 4   ;;  %v2491_v14 = vadd.f32 %v2490_v16, %v4362_v29  ;;  %v2503_v18 = vmul.f32 %v4366_v35, %v4366_v35  ;;  %v2508_v21 = vadd.f32 %v2507_v20, %v2501_v55 }
 0x225   : > { %3504 = dma.vmem_to_hbm [thread:$0]  (%p4643_p1), %s4414_s26, 512, %s4408_s11, %s4418_s22, %s3998_s10, %s3998_s10, %s3999_s20  }
 0x226   : > { %s3792_s21 = scalar_lea.vmem %s2576_s24, 128  ;;  %p4644_p8 = scmp.eq.s32.totalorder %s4070_s9, 1 }
 0x227   : > { %p3793_p2 = scmp.ne.s32.totalorder %s2576_s24, %s3792_s21  ;;  %p3799_p6 = scmp.lt.s32.totalorder %s2576_s24, %s2576_s24 }
 0x228   : > { %p3800_p7 = scmp.lt.s32.totalorder %s3792_s21, %s3792_s21 }
 0x229   : > { %p3794_p0 = pnand %p3793_p2, %p4644_p8 }
 0x22a   : > { %p3801_p11 = por %p3800_p7, %p3799_p6 }
 0x22b   : > { %p3795_p5 = pneg %p3794_p0 }
 0x22d   : > { %p3802_p12 = pnand %p3801_p11, %p3795_p5 }
 0x22f   : > { %3805 = shalt.err (!%p3802_p12)
}
 0x230   : > { %s3806_s11 = scalar_lea.hbm %s4610_s6, 128  ;;  %p4645_p3 = pmov %p4644_p8 }
 0x231   : > { %p3807_p13 = scmp.ne.s32.totalorder %s4610_s6, %s3806_s11  ;;  %p3812_p2 = scmp.lt.u32.totalorder %s3806_s11, %s4610_s6 }
 0x233   : > { %p3808_p9 = pnand %p3807_p13, %p4645_p3 }
 0x235   : > { %p3809_p10 = pneg %p3808_p9 }
 0x237   : > { %p3814_p8 = pnand %p3812_p2, %p3809_p10 }
 0x239   : > { %3817 = shalt.err (!%p3814_p8)
}
 0x23a   : > { %p4646_p0 = pmov %p4645_p3  ;;  %v2492_v22 = vadd.f32 %v2491_v14, %v4366_v35  ;;  %v2504_v23 = vmul.f32 %v4359_v27, %v4359_v27  ;;  %v2509_v24 = vadd.f32 %v2508_v21, %v2502_v19  ;;  %s4475_s27 = scalar_lea.hbm %s4607_s3, %s3011_s12  ;;  %v2505_v26 = vmul.f32 %v4364_v32, %v4364_v32 }
 0x23b   : > { %s2534_s15 = sshll.u32 %s4356_s16, 4  ;;  %s4000_s12 = smov [#allocation8]   ;;  %s4478_s15 = int_to_ptr.vmem [resolvable:$true] %s2534_s15 }
 0x23c   : > { %3508 = dma.vmem_to_hbm [thread:$0]  (%p4646_p0), %s2576_s24, 128, %s4610_s6, [#allocation13]   ;;  %v2493_v25 = vadd.f32 %v4359_v27, %v2492_v22  ;;  %v2510_v28 = vadd.f32 %v2509_v24, %v2503_v18 }
 0x23d   : > { %s2516_s24 = scalar_lea.sflag [#allocation4], %s4202_s25  ;;  %s3818_s11 = scalar_lea.vmem %s4478_s15, 512 }
 0x23e   : > { %p3819_p5 = scmp.ne.s32.totalorder %s4478_s15, %s3818_s11  ;;  %s3822_s26 = sshll.u32 %s4000_s12, 4  ;;  %s3823_s26 = int_to_ptr.vmem [resolvable:$false] %s3822_s26 }
 0x23f   : > { %s3824_s16 = scalar_lea.vmem %s3823_s26, 1024  ;;  %p3825_p11 = scmp.lt.s32.totalorder %s4478_s15, %s3823_s26 }
 0x240   : > { %p3820_p6 = pnand %p3819_p5, %p4643_p1  ;;  %p3826_p12 = scmp.lt.s32.totalorder %s3824_s16, %s3818_s11 }
 0x242   : > { %p3821_p7 = pneg %p3820_p6  ;;  %p3827_p13 = por %p3826_p12, %p3825_p11 }
 0x244   : > { %p3828_p3 = pnand %p3827_p13, %p3821_p7 }
 0x246   : > { %3831 = shalt.err (!%p3828_p3)
}
 0x247   : > { %s3832_s22 = scalar_lea.hbm %s4475_s27, 512  ;;  %s3836_s13 = scalar_lea.hbm %s4607_s3, 1024 }
 0x248   : > { %p3833_p9 = scmp.ne.s32.totalorder %s4475_s27, %s3832_s22  ;;  %p3837_p8 = scmp.lt.u32.totalorder %s4475_s27, %s4607_s3 }
 0x249   : > { %p3838_p0 = scmp.lt.u32.totalorder %s3836_s13, %s3832_s22  ;;  %p3840_p6 = scmp.lt.u32.totalorder %s3832_s22, %s4475_s27 }
 0x24a   : > { %p3834_p10 = pnand %p3833_p9, %p4643_p1 }
 0x24b   : > { %p3839_p5 = por %p3838_p0, %p3837_p8 }
 0x24c   : > { %p3835_p2 = pneg %p3834_p10 }
 0x24d   : > { %p3841_p7 = por %p3840_p6, %p3839_p5 }
 0x24f   : > { %p3842_p11 = pnand %p3841_p7, %p3835_p2 }
 0x251   : > { %3845 = shalt.err (!%p3842_p11)
}
 0x252   : > { %3503 = dma.vmem_to_hbm [thread:$0]  (%p4643_p1), %s4478_s15, 512, %s4475_s27, %s2516_s24, %s3998_s10, %s3998_s10, %s3999_s20   ;;  %v2487_v27 = vld [vmem:[#allocation14] sm:$0xff]  ;;  %v2494_v29 = vadd.f32 %v4364_v32, %v2493_v25  ;;  %v2511_v30 = vadd.f32 %v2510_v28, %v2504_v23  ;;  %v2497_v31 = vld [vmem:[#allocation15] sm:$0xff] }
 0x253   : > { %s4001_s21 = smov [#allocation11]   ;;  %s4002_s12 = smov [#allocation14]  }
 0x254   : > { %s2564_s11 = sshll.u32 %s4001_s21, 4  ;;  %s2586_s26 = sshll.u32 %s4002_s12, 4  ;;  %v2495_v33 = vadd.f32 %v2494_v29, %v2487_v27  ;;  %v2512_v34 = vadd.f32 %v2511_v30, %v2505_v26  ;;  %s2565_s11 = int_to_ptr.vmem [resolvable:$true] %s2564_s11  ;;  %s4511_s26 = int_to_ptr.vmem [resolvable:$true] %s2586_s26 }
 0x255   : > { %s3846_s17 = scalar_lea.vmem %s2565_s11, 128  ;;  %p4647_p13 = scmp.eq.s32.totalorder %s4070_s9, 1 }
 0x256   : > { %p3847_p12 = scmp.ne.s32.totalorder %s2565_s11, %s3846_s17  ;;  %p3853_p1 = scmp.lt.s32.totalorder %s2565_s11, %s2565_s11 }
 0x257   : > { %p3854_p10 = scmp.lt.s32.totalorder %s3846_s17, %s3846_s17 }
 0x258   : > { %p3848_p3 = pnand %p3847_p12, %p4647_p13 }
 0x259   : > { %p3855_p2 = por %p3854_p10, %p3853_p1 }
 0x25a   : > { %p3849_p9 = pneg %p3848_p3 }
 0x25c   : > { %p3856_p8 = pnand %p3855_p2, %p3849_p9 }
 0x25e   : > { %3859 = shalt.err (!%p3856_p8)
}
 0x25f   : > { %s3860_s20 = scalar_lea.hbm %s4609_s5, 128  ;;  %p4648_p5 = pmov %p4647_p13 }
 0x260   : > { %p3861_p0 = scmp.ne.s32.totalorder %s4609_s5, %s3860_s20  ;;  %p3866_p11 = scmp.lt.u32.totalorder %s3860_s20, %s4609_s5 }
 0x262   : > { %p3862_p6 = pnand %p3861_p0, %p4648_p5 }
 0x264   : > { %p3863_p7 = pneg %p3862_p6 }
 0x266   : > { %p3868_p12 = pnand %p3866_p11, %p3863_p7 }
 0x268   : > { %3871 = shalt.err (!%p3868_p12)
}
 0x269   : > { %p4649_p13 = pmov %p4648_p5  ;;  %2496 = vst [vmem:[#allocation14] sm:$0xff] %v2495_v33  ;;  %v2513_v32 = vadd.f32 %v2512_v34, %v2497_v31  ;;  %s4003_s18 = smov [#allocation15]  }
 0x26a   : > { %s2597_s13 = sshll.u32 %s4003_s18, 4  ;;  %s3872_s23 = scalar_lea.vmem %s4511_s26, 128  ;;  %s2598_s13 = int_to_ptr.vmem [resolvable:$true] %s2597_s13 }
 0x26b   : > { %3506 = dma.vmem_to_hbm [thread:$0]  (%p4649_p13), %s2565_s11, 128, %s4609_s5, [#allocation10]  }
 0x26c   : > { %p3873_p3 = scmp.ne.s32.totalorder %s4511_s26, %s3872_s23  ;;  %p4650_p9 = pmov %p4648_p5 }
 0x26d   : > { %p3879_p2 = scmp.lt.s32.totalorder %s4511_s26, %s4511_s26  ;;  %p3880_p8 = scmp.lt.s32.totalorder %s3872_s23, %s3872_s23 }
 0x26e   : > { %p3874_p1 = pnand %p3873_p3, %p4650_p9 }
 0x26f   : > { %p3881_p0 = por %p3880_p8, %p3879_p2 }
 0x270   : > { %p3875_p10 = pneg %p3874_p1 }
 0x272   : > { %p3882_p5 = pnand %p3881_p0, %p3875_p10 }
 0x274   : > { %3885 = shalt.err (!%p3882_p5)
}
 0x275   : > { %s3886_s11 = scalar_lea.hbm %s4611_s7, 128  ;;  %p4651_p7 = pmov %p4650_p9 }
 0x276   : > { %p3887_p6 = scmp.ne.s32.totalorder %s4611_s7, %s3886_s11  ;;  %p3892_p13 = scmp.lt.u32.totalorder %s3886_s11, %s4611_s7 }
 0x278   : > { %p3888_p11 = pnand %p3887_p6, %p4651_p7 }
 0x27a   : > { %p3889_p12 = pneg %p3888_p11 }
 0x27c   : > { %p3894_p3 = pnand %p3892_p13, %p3889_p12 }
 0x27e   : > { %3897 = shalt.err (!%p3894_p3)
}
 0x27f   : > { %p4652_p9 = pmov %p4651_p7  ;;  %2514 = vst [vmem:[#allocation15] sm:$0xff] %v2513_v32  ;;  %s3898_s15 = scalar_lea.vmem %s2598_s13, 128 }
 0x280   : > { %p3899_p1 = scmp.ne.s32.totalorder %s2598_s13, %s3898_s15  ;;  %p4653_p10 = pmov %p4651_p7 }
 0x281   : > { %3510 = dma.vmem_to_hbm [thread:$0]  (%p4652_p9), %s4511_s26, 128, %s4611_s7, [#allocation13]  }
 0x282   : > { %p3900_p2 = pnand %p3899_p1, %p4653_p10  ;;  %p3905_p0 = scmp.lt.s32.totalorder %s2598_s13, %s2598_s13 }
 0x283   : > { %p3906_p5 = scmp.lt.s32.totalorder %s3898_s15, %s3898_s15 }
 0x284   : > { %p3901_p8 = pneg %p3900_p2 }
 0x285   : > { %p3907_p6 = por %p3906_p5, %p3905_p0 }
 0x287   : > { %p3908_p7 = pnand %p3907_p6, %p3901_p8 }
 0x289   : > { %3911 = shalt.err (!%p3908_p7)
}
 0x28a   : > { %s3912_s22 = scalar_lea.hbm %s4612_s8, 128  ;;  %p4654_p12 = pmov %p4652_p9 }
 0x28b   : > { %p3913_p11 = scmp.ne.s32.totalorder %s4612_s8, %s3912_s22  ;;  %p3918_p9 = scmp.lt.u32.totalorder %s3912_s22, %s4612_s8 }
 0x28d   : > { %p3914_p13 = pnand %p3913_p11, %p4654_p12 }
 0x28f   : > { %p3915_p3 = pneg %p3914_p13 }
 0x291   : > { %p3920_p1 = pnand %p3918_p9, %p3915_p3 }
 0x293   : > { %3923 = shalt.err (!%p3920_p1)
}
 0x294   : > { %3512 = dma.vmem_to_hbm [thread:$0]  (%p4653_p10), %s2598_s13, 128, %s4612_s8, [#allocation16]  }
 0x295   : > { %p4655_p2 = pmov %p4653_p10 }
 0x297   : > { %3949 = dma.done.wait (%p4655_p2), [#allocation10], 128   ;;  %p4656_p8 = pmov %p4655_p2 }
 0x298   : > { %p4657_p0 = pmov %p4655_p2 }
 0x299   : > { %3951 = vsyncadd (%p4656_p8), [#allocation10], 4294967168 }
 0x29a   : > { %3953 = dma.done.wait (%p4657_p0), [#allocation13], 256   ;;  %p4658_p5 = pmov %p4657_p0 }
 0x29b   : > { %p4659_p6 = pmov %p4657_p0 }
 0x29c   : > { %3955 = vsyncadd (%p4658_p5), [#allocation13], 4294967040 }
 0x29d   : > { %3957 = dma.done.wait (%p4659_p6), [#allocation16], 128   ;;  %p4660_p7 = pmov %p4657_p0 }
 0x29f   : > { %3959 = vsyncadd (%p4660_p7), [#allocation16], 4294967168 }
 0x2a0 PF: > { %s4661_s11 = sld [smem:[#allocation27_spill]]  ;;  %s4662_s13 = sld [smem:[#allocation30_spill]] }
 0x2a6   : > { %s2625_s12 = sand.u32 1, %s4661_s11   ;;  %p4663_p11 = scmp.ne.s32.totalorder %s4662_s13, 0 }
 0x2a7   : > { %s2626_s17 = scalar_lea.sflag [#allocation4], %s2625_s12 }
 0x2a8   : > { %p3531_p12 = pnand %p2764_p4, %p4663_p11 }
 0x2aa   : > { %3961 = dma.done.wait (!%p3531_p12), %s2626_s17, 512  }
 0x2ab   : > { %3963 = vsyncadd (!%p3531_p12), %s2626_s17, 4294966784  ;;  %s4664_s25 = sadd.s32 4294967294, %s3982_s30  }
 0x2ac   : > { %s2634_s10 = sand.u32 1, %s4664_s25  }
 0x2ad   : > { %s2635_s20 = scalar_lea.sflag [#allocation10], %s2634_s10 }
 0x2ae   : > { %3965 = dma.done.wait (!%p3531_p12), %s2635_s20, 512  }
 0x2af   : > { %3967 = vsyncadd (!%p3531_p12), %s2635_s20, 4294966784  ;;  %s4665_s30 = sld [smem:[#allocation28_spill]]  ;;  %s4666_s9 = sld [smem:[#allocation29_spill]] }
 0x2b0   : > { %s4667_s27 = smov %s3974_s28  ;;  %s4668_s28 = smov %s3978_s29 }
 0x2b5   : > { %p28_p13 = scmp.ge.s32.totalorder %s4665_s30, 4   ;;  %s4669_s29 = smov %s4666_s9 }
 0x2b7   :  { %30 = sbr.rel (!%p28_p13) target bundleno = 10 (0xa), region = 160 }
 0x2be   :  { %2640 = vsyncpa [#allocation3], 1 }
 0x2bf   :  { %2642 = vsyncpa [#allocation3 + $0x1], 1 }
 0x2c0   :  { %2643 = vsyncpa [#allocation6], 1 }
 0x2c1   :  { %2644 = vsyncpa [#allocation4], 1 }
 0x2c2   :  { %2646 = vsyncpa [#allocation4 + $0x1], 1 }
 0x2c3   :  { %2647 = vsyncpa [#allocation10], 1 }
 0x2c4   :  { %2649 = vsyncpa [#allocation10 + $0x1], 1 }
 0x2c5   :  { %2650 = vsyncpa [#allocation13], 1 }
 0x2c6   :  { %2651 = vsyncpa [#allocation16], 1 }

</bundles_post_ra>
